<compile_context>
chip_gen: v7x
topology: tpu7x:2x2x1
jax: 0.10.0
libtpu: 0.0.40
codegen_flags: <defaults>
</compile_context>

<pallas_src>
import jax
import jax.numpy as jnp
from jax.experimental import pallas as pl
from jax.experimental.pallas import tpu as pltpu


def qnet_kernel(x_ref, w1_ref, b1_ref, w2_ref, b2_ref, w3_ref, b3_ref, o_ref):
    """One batch tile of the fused 3-layer MLP.

    x_ref:  (TB, S)  f32 (cast to bf16 in-kernel)
    w1_ref: (S, F1)  bf16   b1_ref: (1, F1) f32
    w2_ref: (F1, F2) bf16   b2_ref: (1, F2) f32
    w3_ref: (F2, A)  bf16   b3_ref: (1, A)  f32
    o_ref:  (TB, A)  f32
    """
    # In-kernel bf16 cast of the streamed operand (no separate XLA cast op / HBM pass).
    x = x_ref[...].astype(jnp.bfloat16)
    # fc1 + ReLU (f32 accumulate, f32 epilogue)
    h1 = jnp.dot(x, w1_ref[...], preferred_element_type=jnp.float32) + b1_ref[...]
    h1 = jnp.maximum(h1, 0.0)
    # fc2 + ReLU
    h2 = jnp.dot(h1.astype(w2_ref.dtype), w2_ref[...],
                 preferred_element_type=jnp.float32) + b2_ref[...]
    h2 = jnp.maximum(h2, 0.0)
    # fc3 (no activation)
    o_ref[...] = (jnp.dot(h2.astype(w3_ref.dtype), w3_ref[...],
                          preferred_element_type=jnp.float32)
                  + b3_ref[...]).astype(o_ref.dtype)


def _detect_num_tensorcores() -> int:
    """2 TensorCores per chip on v7x, 1 on v5e/v6e. Conservative fallback: 1."""
    try:
        kind = jax.devices()[0].device_kind.lower()
    except Exception:
        return 1
    return 2 if "v7" in kind else 1


def prepare_params(w1, b1, w2, b2, w3, b3):
    """One-time param prep (outside the hot path): weights -> bf16, biases -> (1, F) f32."""
    to_bf16 = lambda w: jnp.asarray(w, jnp.bfloat16)
    to_bias = lambda b: jnp.asarray(b, jnp.float32).reshape(1, -1)
    return (to_bf16(w1), to_bias(b1), to_bf16(w2), to_bias(b2), to_bf16(w3), to_bias(b3))


def qnetwork_forward(x, params, *, num_steps=None):
    """Fused QNetwork forward.  x: (B, S) f32, params from prepare_params()."""
    w1, b1, w2, b2, w3, b3 = params
    B, S = x.shape
    F1, F2, A = w1.shape[1], w2.shape[1], w3.shape[1]

    if num_steps is None:
        num_steps = _detect_num_tensorcores()
    num_steps = max(1, min(int(num_steps), pl.cdiv(B, 16)))

    # Whole batch in `num_steps` tiles, each a multiple of 16 rows. If B is ragged the
    # final block is handled by Pallas (padded reads / masked writes); each output row
    # depends only on its own input row, so padding rows cannot corrupt valid rows.
    tb = ((pl.cdiv(B, num_steps) + 15) // 16) * 16
    grid = (pl.cdiv(B, tb),)

    flops = 2 * B * (S * F1 + F1 * F2 + F2 * A)
    bytes_accessed = (4 * B * S                          # f32 x stream (cast in-kernel)
                      + 2 * (S * F1 + F1 * F2 + F2 * A)  # bf16 weights (loaded once)
                      + 4 * (F1 + F2 + A)                # f32 biases
                      + 4 * B * A)                       # f32 output

    # Resident operands: constant index_map -> same VMEM block for every grid step.
    resident = lambda a: pl.BlockSpec(a.shape, lambda i: (0, 0))

    return pl.pallas_call(
        qnet_kernel,
        out_shape=jax.ShapeDtypeStruct((B, A), jnp.float32),
        grid=grid,
        in_specs=[
            pl.BlockSpec((tb, S), lambda i: (i, 0)),   # x: one batch tile per grid step
            resident(w1), resident(b1),
            resident(w2), resident(b2),
            resident(w3), resident(b3),
        ],
        out_specs=pl.BlockSpec((tb, A), lambda i: (i, 0)),
        compiler_params=pltpu.CompilerParams(dimension_semantics=("parallel",)),
        cost_estimate=pl.CostEstimate(flops=flops, transcendentals=0,
                                      bytes_accessed=bytes_accessed),
    )(x, w1, b1, w2, b2, w3, b3)


def init_linear(key, fan_in, fan_out):
    """Matches torch.nn.Linear default init: U(-1/sqrt(fan_in), 1/sqrt(fan_in))."""
    kw, kb = jax.random.split(key)
    bound = 1.0 / jnp.sqrt(fan_in)
    w = jax.random.uniform(kw, (fan_in, fan_out), jnp.float32, -bound, bound)  # (in, out)
    b = jax.random.uniform(kb, (1, fan_out), jnp.float32, -bound, bound)
    return w, b


if __name__ == "__main__":
    # state_size > fc1_size > fc2_size > action_size
    batch = 512
    state_size, fc1_size, fc2_size, action_size = 32, 24, 16, 4

    key = jax.random.PRNGKey(0)
    k_x, k1, k2, k3 = jax.random.split(key, 4)

    x = jax.random.normal(k_x, (batch, state_size), jnp.float32)
    w1, b1 = init_linear(k1, state_size, fc1_size)
    w2, b2 = init_linear(k2, fc1_size, fc2_size)
    w3, b3 = init_linear(k3, fc2_size, action_size)

    # One-time prep: bf16 weight storage, f32 row-vector biases.
    params = prepare_params(w1, b1, w2, b2, w3, b3)

    out = qnetwork_forward(x, params)   # grid=(1,) on v5e/v6e, grid=(2,) parallel on v7x
    out = jax.block_until_ready(out)
    assert out.shape == (batch, action_size)

    # Reference 1: same bf16-weight / f32-accumulate numerics as the kernel (tight check).
    xb = x.astype(jnp.bfloat16)
    w1b, w2b, w3b = (w.astype(jnp.bfloat16) for w in (w1, w2, w3))
    r1 = jnp.maximum(jnp.dot(xb, w1b, preferred_element_type=jnp.float32) + b1, 0.0)
    r2 = jnp.maximum(jnp.dot(r1.astype(jnp.bfloat16), w2b,
                             preferred_element_type=jnp.float32) + b2, 0.0)
    ref_bf16 = jnp.dot(r2.astype(jnp.bfloat16), w3b,
                       preferred_element_type=jnp.float32) + b3
    assert jnp.allclose(out, ref_bf16, atol=1e-4, rtol=1e-4)

    # Reference 2: pure-f32 PyTorch-equivalent forward (loose check on bf16 rounding).
    ref_f32 = jnp.maximum(x @ w1 + b1, 0.0)
    ref_f32 = jnp.maximum(ref_f32 @ w2 + b2, 0.0)
    ref_f32 = ref_f32 @ w3 + b3
    assert jnp.allclose(out, ref_f32, atol=5e-2, rtol=5e-2)

    print("KERNEL_OK")
</pallas_src>

<mosaic_0001>
module attributes {stable_mosaic.version = 11 : i64} {
  func.func @qnet_kernel(%arg0: i32, %arg1: memref<512x32xf32, #tpu.memory_space<vmem>>, %arg2: memref<32x24xbf16, #tpu.memory_space<vmem>>, %arg3: memref<1x24xf32, #tpu.memory_space<vmem>>, %arg4: memref<24x16xbf16, #tpu.memory_space<vmem>>, %arg5: memref<1x16xf32, #tpu.memory_space<vmem>>, %arg6: memref<16x4xbf16, #tpu.memory_space<vmem>>, %arg7: memref<1x4xf32, #tpu.memory_space<vmem>>, %arg8: memref<512x4xf32, #tpu.memory_space<vmem>>) attributes {dimension_semantics = [#tpu.dimension_semantics<parallel>], iteration_bounds = array<i64: 1>, scalar_prefetch = 0 : i64, scratch_operands = 0 : i64, tpu.core_type = #tpu.core_type<tc>, window_params = [{transform_indices = @transform_0, window_bounds = array<i64: 512, 32>}, {pipeline_mode = #tpu.pipeline_mode<synchronous>, transform_indices = @transform_1, window_bounds = array<i64: 32, 24>}, {pipeline_mode = #tpu.pipeline_mode<synchronous>, transform_indices = @transform_2, window_bounds = array<i64: 1, 24>}, {pipeline_mode = #tpu.pipeline_mode<synchronous>, transform_indices = @transform_3, window_bounds = array<i64: 24, 16>}, {pipeline_mode = #tpu.pipeline_mode<synchronous>, transform_indices = @transform_4, window_bounds = array<i64: 1, 16>}, {pipeline_mode = #tpu.pipeline_mode<synchronous>, transform_indices = @transform_5, window_bounds = array<i64: 16, 4>}, {pipeline_mode = #tpu.pipeline_mode<synchronous>, transform_indices = @transform_6, window_bounds = array<i64: 1, 4>}, {transform_indices = @transform_7, window_bounds = array<i64: 512, 4>}]} {
    %c0 = arith.constant 0 : index
    %c0_0 = arith.constant 0 : index
    %0 = vector.load %arg1[%c0, %c0_0] : memref<512x32xf32, #tpu.memory_space<vmem>>, vector<512x32xf32>
    %1 = arith.truncf %0 : vector<512x32xf32> to vector<512x32xbf16>
    %c0_1 = arith.constant 0 : index
    %c0_2 = arith.constant 0 : index
    %2 = vector.load %arg2[%c0_1, %c0_2] : memref<32x24xbf16, #tpu.memory_space<vmem>>, vector<32x24xbf16>
    %cst = arith.constant dense<0.000000e+00> : vector<512x24xf32>
    %3 = tpu.matmul %1, %2, %cst {dimension_numbers = #tpu.dot_dimension_numbers<[1], [0], [0], [1], [0, 0, 1, 1], [], []>} : vector<512x32xbf16>, vector<32x24xbf16>, vector<512x24xf32> -> vector<512x24xf32>
    %c0_3 = arith.constant 0 : index
    %c0_4 = arith.constant 0 : index
    %4 = vector.load %arg3[%c0_3, %c0_4] : memref<1x24xf32, #tpu.memory_space<vmem>>, vector<1x24xf32>
    %5 = vector.broadcast %4 : vector<1x24xf32> to vector<512x24xf32>
    %6 = arith.addf %3, %5 : vector<512x24xf32>
    %cst_5 = arith.constant 0.000000e+00 : f32
    %7 = vector.broadcast %cst_5 : f32 to vector<512x24xf32>
    %8 = arith.maximumf %6, %7 : vector<512x24xf32>
    %9 = arith.truncf %8 : vector<512x24xf32> to vector<512x24xbf16>
    %c0_6 = arith.constant 0 : index
    %c0_7 = arith.constant 0 : index
    %10 = vector.load %arg4[%c0_6, %c0_7] : memref<24x16xbf16, #tpu.memory_space<vmem>>, vector<24x16xbf16>
    %cst_8 = arith.constant dense<0.000000e+00> : vector<512x16xf32>
    %11 = tpu.matmul %9, %10, %cst_8 {dimension_numbers = #tpu.dot_dimension_numbers<[1], [0], [0], [1], [0, 0, 1, 1], [], []>} : vector<512x24xbf16>, vector<24x16xbf16>, vector<512x16xf32> -> vector<512x16xf32>
    %c0_9 = arith.constant 0 : index
    %c0_10 = arith.constant 0 : index
    %12 = vector.load %arg5[%c0_9, %c0_10] : memref<1x16xf32, #tpu.memory_space<vmem>>, vector<1x16xf32>
    %13 = vector.broadcast %12 : vector<1x16xf32> to vector<512x16xf32>
    %14 = arith.addf %11, %13 : vector<512x16xf32>
    %cst_11 = arith.constant 0.000000e+00 : f32
    %15 = vector.broadcast %cst_11 : f32 to vector<512x16xf32>
    %16 = arith.maximumf %14, %15 : vector<512x16xf32>
    %17 = arith.truncf %16 : vector<512x16xf32> to vector<512x16xbf16>
    %c0_12 = arith.constant 0 : index
    %c0_13 = arith.constant 0 : index
    %18 = vector.load %arg6[%c0_12, %c0_13] : memref<16x4xbf16, #tpu.memory_space<vmem>>, vector<16x4xbf16>
    %cst_14 = arith.constant dense<0.000000e+00> : vector<512x4xf32>
    %19 = tpu.matmul %17, %18, %cst_14 {dimension_numbers = #tpu.dot_dimension_numbers<[1], [0], [0], [1], [0, 0, 1, 1], [], []>} : vector<512x16xbf16>, vector<16x4xbf16>, vector<512x4xf32> -> vector<512x4xf32>
    %c0_15 = arith.constant 0 : index
    %c0_16 = arith.constant 0 : index
    %20 = vector.load %arg7[%c0_15, %c0_16] : memref<1x4xf32, #tpu.memory_space<vmem>>, vector<1x4xf32>
    %21 = vector.broadcast %20 : vector<1x4xf32> to vector<512x4xf32>
    %22 = arith.addf %19, %21 : vector<512x4xf32>
    %c0_17 = arith.constant 0 : index
    %c0_18 = arith.constant 0 : index
    %23 = vector.load %arg8[%c0_17, %c0_18] : memref<512x4xf32, #tpu.memory_space<vmem>>, vector<512x4xf32>
    tpu.vector_store %arg8[%c0_17, %c0_18], %22 {strides = array<i32>} : memref<512x4xf32, #tpu.memory_space<vmem>>, vector<512x4xf32>,
    return
  }
  func.func @transform_0(%arg0: i32) -> (i32, i32) {
    %c0_i32 = arith.constant 0 : i32
    %c0_i32_0 = arith.constant 0 : i32
    return %arg0, %c0_i32 : i32, i32
  }
  func.func @transform_1(%arg0: i32) -> (i32, i32) {
    %c0_i32 = arith.constant 0 : i32
    %c0_i32_0 = arith.constant 0 : i32
    %c0_i32_1 = arith.constant 0 : i32
    return %c0_i32, %c0_i32_0 : i32, i32
  }
  func.func @transform_2(%arg0: i32) -> (i32, i32) {
    %c0_i32 = arith.constant 0 : i32
    %c0_i32_0 = arith.constant 0 : i32
    %c0_i32_1 = arith.constant 0 : i32
    return %c0_i32, %c0_i32_0 : i32, i32
  }
  func.func @transform_3(%arg0: i32) -> (i32, i32) {
    %c0_i32 = arith.constant 0 : i32
    %c0_i32_0 = arith.constant 0 : i32
    %c0_i32_1 = arith.constant 0 : i32
    return %c0_i32, %c0_i32_0 : i32, i32
  }
  func.func @transform_4(%arg0: i32) -> (i32, i32) {
    %c0_i32 = arith.constant 0 : i32
    %c0_i32_0 = arith.constant 0 : i32
    %c0_i32_1 = arith.constant 0 : i32
    return %c0_i32, %c0_i32_0 : i32, i32
  }
  func.func @transform_5(%arg0: i32) -> (i32, i32) {
    %c0_i32 = arith.constant 0 : i32
    %c0_i32_0 = arith.constant 0 : i32
    %c0_i32_1 = arith.constant 0 : i32
    return %c0_i32, %c0_i32_0 : i32, i32
  }
  func.func @transform_6(%arg0: i32) -> (i32, i32) {
    %c0_i32 = arith.constant 0 : i32
    %c0_i32_0 = arith.constant 0 : i32
    %c0_i32_1 = arith.constant 0 : i32
    return %c0_i32, %c0_i32_0 : i32, i32
  }
  func.func @transform_7(%arg0: i32) -> (i32, i32) {
    %c0_i32 = arith.constant 0 : i32
    %c0_i32_0 = arith.constant 0 : i32
    return %arg0, %c0_i32 : i32, i32
  }
}

</mosaic_0001>

<bundles_post_ra>
// kernel: tpu_custom_call.1
= control target key start
LH: loop header
LB: loop body
LE: loop exit
PB: predicated region body
PF: predicated region fallthrough
CT: control target
= control target key end

     0   :  { %vm146_vm0 = vcmask 261120   ;;  %vm744_vm1 = vcmask 1043456   ;;  %vm647_vm2 = vcmask 195584   ;;  %vm1148_vm3 = vcmask 130048   ;;  %s2856_s1 = inlined_call_operand.vmem [shape: bf16[32,24], index: 1, kind: input, shape index: {}]   ;;  %s2857_s0 = inlined_call_operand.vmem [shape: f32[512,32], index: 0, kind: input, shape index: {}]   ;;  %s2858_s3 = inlined_call_operand.vmem [shape: bf16[24,16], index: 3, kind: input, shape index: {}]   ;;  %s2859_s2 = inlined_call_operand.vmem [shape: f32[1,24], index: 2, kind: input, shape index: {}]   ;;  %s2860_s5 = inlined_call_operand.vmem [shape: bf16[16,4], index: 5, kind: input, shape index: {}]   ;;  %s2861_s4 = inlined_call_operand.vmem [shape: f32[1,16], index: 4, kind: input, shape index: {}]   ;;  %s2862_s6 = inlined_call_operand.vmem [shape: f32[1,4], index: 6, kind: input, shape index: {}]   ;;  %s2863_s7 = inlined_call_operand.vmem [shape: f32[512,4], index: 7, kind: output, shape index: {}]  }
   0x1   :  { %v2015_v0 = vld [vmem:[%s2856_s1] sm:$0xff]   ;;  %v2016_v1 = vld [vmem:[%s2856_s1 + $0x8] sm:$0xff]   ;;  %v29_v5 = vld [vmem:[%s2857_s0 + $0x10] sm:$0xff]  ;;  %vm1534_vm4 = vcmask 31744  }
   0x2   :  { %1808 = vmatprep.subr.bf16.mxu0 %v2015_v0  ;;  %v27_v2 = vld [vmem:[%s2857_s0] sm:$0xff]  ;;  %v28_v3 = vld [vmem:[%s2857_s0 + $0x8] sm:$0xff]  ;;  %2010 = vmatprep.subr.bf16.mxu1 %v2015_v0  ;;  %v30_v6 = vld [vmem:[%s2857_s0 + $0x18] sm:$0xff] }
   0x3   :  { %1809 = vmatpush3.bf16.msra.mxu0 %v2015_v0  ;;  %v91_v4 = vpack.c.bf16 %v28_v3, %v27_v2  ;;  %2012 = vmatpush3.bf16.msra.mxu1 %v2015_v0  ;;  %v31_v7 = vld [vmem:[%s2857_s0 + $0x20] sm:$0xff]  ;;  %v32_v8 = vld [vmem:[%s2857_s0 + $0x28] sm:$0xff]  ;;  %v92_v9 = vpack.c.bf16 %v30_v6, %v29_v5  ;;  %v33_v11 = vld [vmem:[%s2857_s0 + $0x30] sm:$0xff] }
   0x4   :  { %1810 = vmatprep.subr.bf16.mxu0 %v2016_v1  ;;  %2011 = vmatprep.subr.bf16.mxu1 %v2016_v1  ;;  %v93_v10 = vpack.c.bf16 %v32_v8, %v31_v7  ;;  %v34_v12 = vld [vmem:[%s2857_s0 + $0x38] sm:$0xff]  ;;  %v35_v13 = vld [vmem:[%s2857_s0 + $0x40] sm:$0xff]  ;;  %v36_v14 = vld [vmem:[%s2857_s0 + $0x48] sm:$0xff] }
   0x5   :  { %1812 = vmatprep.mubr.msk.bf16.mxu0 %vm146_vm0, %v91_v4  ;;  %v59_v15 = vld [vmem:[%s2857_s0 + $0x100] sm:$0xff]  ;;  %v60_v16 = vld [vmem:[%s2857_s0 + $0x108] sm:$0xff]  ;;  %v61_v17 = vld [vmem:[%s2857_s0 + $0x110] sm:$0xff]  ;;  %v94_v19 = vpack.c.bf16 %v34_v12, %v33_v11  ;;  %v95_v24 = vpack.c.bf16 %v36_v14, %v35_v13 }
   0x6   :  { %v62_v18 = vld [vmem:[%s2857_s0 + $0x118] sm:$0xff]  ;;  %v107_v20 = vpack.c.bf16 %v60_v16, %v59_v15  ;;  %v63_v22 = vld [vmem:[%s2857_s0 + $0x120] sm:$0xff]  ;;  %v64_v23 = vld [vmem:[%s2857_s0 + $0x128] sm:$0xff] }
   0x7   :  { %1811 = vmatpush3.bf16.msra.mxu0 %v2016_v1  ;;  %2013 = vmatpush3.bf16.msra.mxu1 %v2016_v1  ;;  %v108_v21 = vpack.c.bf16 %v62_v18, %v61_v17  ;;  %v109_v25 = vpack.c.bf16 %v64_v23, %v63_v22  ;;  %v37_v26 = vld [vmem:[%s2857_s0 + $0x50] sm:$0xff]  ;;  %v66_v28 = vld [vmem:[%s2857_s0 + $0x138] sm:$0xff]  ;;  %v67_v30 = vld [vmem:[%s2857_s0 + $0x140] sm:$0xff] }
   0x8   :  { %1844 = vmatprep.mubr.msk.bf16.mxu1 %vm146_vm0, %v107_v20  ;;  %v65_v27 = vld [vmem:[%s2857_s0 + $0x130] sm:$0xff]  ;;  %v38_v29 = vld [vmem:[%s2857_s0 + $0x58] sm:$0xff]  ;;  %v68_v31 = vld [vmem:[%s2857_s0 + $0x148] sm:$0xff] }
   0x9   :  { %v39_v32 = vld [vmem:[%s2857_s0 + $0x60] sm:$0xff]  ;;  %v40_v33 = vld [vmem:[%s2857_s0 + $0x68] sm:$0xff]  ;;  %v110_v34 = vpack.c.bf16 %v66_v28, %v65_v27  ;;  %v96_v35 = vpack.c.bf16 %v38_v29, %v37_v26  ;;  %v111_v36 = vpack.c.bf16 %v68_v31, %v67_v30  ;;  %v41_v40 = vld [vmem:[%s2857_s0 + $0x70] sm:$0xff] }
   0xa   :  { %1813 = vmatmul.mubr.msk.bf16.vlgmr.msra.gmra.mrb[0].mxu0 %vm146_vm0, %v92_v9  ;;  %1845 = vmatmul.mubr.msk.bf16.vlgmr.msra.gmra.mrb[0].mxu1 %vm146_vm0, %v108_v21  ;;  %v97_v37 = vpack.c.bf16 %v40_v33, %v39_v32  ;;  %v2017_v38 = vld [vmem:[%s2858_s3] sm:$0xff]   ;;  %v2018_v39 = vld [vmem:[%s2858_s3 + $0x8] ss:$0 sps:$4 sm:$0xff]   ;;  %v69_v41 = vld [vmem:[%s2857_s0 + $0x150] sm:$0xff] }
   0xb   :  { %1816 = vmatprep.mubr.msk.bf16.mxu0 %vm146_vm0, %v93_v10  ;;  %1848 = vmatprep.mubr.msk.bf16.mxu1 %vm146_vm0, %v109_v25  ;;  %v70_v42 = vld [vmem:[%s2857_s0 + $0x158] sm:$0xff]  ;;  %v71_v44 = vld [vmem:[%s2857_s0 + $0x160] sm:$0xff]  ;;  %v72_v45 = vld [vmem:[%s2857_s0 + $0x168] sm:$0xff]  ;;  %v746_v49 = vsel %vm744_vm1, %v2018_v39, 0 }
   0xc   :  { %v42_v43 = vld [vmem:[%s2857_s0 + $0x78] sm:$0xff]  ;;  %1876 = vmatprep.subr.bf16.mxu1 %v2017_v38  ;;  %v43_v46 = vld [vmem:[%s2857_s0 + $0x80] sm:$0xff]  ;;  %v44_v47 = vld [vmem:[%s2857_s0 + $0x88] sm:$0xff]  ;;  %v112_v48 = vpack.c.bf16 %v70_v42, %v69_v41  ;;  %v113_v51 = vpack.c.bf16 %v72_v45, %v71_v44 }
   0xd   :  { %1877 = vmatpush3.bf16.msra.mxu1 %v2017_v38  ;;  %v98_v50 = vpack.c.bf16 %v42_v43, %v41_v40  ;;  %v99_v52 = vpack.c.bf16 %v44_v47, %v43_v46  ;;  %v45_v53 = vld [vmem:[%s2857_s0 + $0x90] sm:$0xff]  ;;  %v74_v55 = vld [vmem:[%s2857_s0 + $0x178] sm:$0xff]  ;;  %v75_v57 = vld [vmem:[%s2857_s0 + $0x180] sm:$0xff] }
   0xe   :  { %2014 = vmatprep.subr.msk.bf16.mxu1 %vm744_vm1, %v2018_v39  ;;  %v73_v54 = vld [vmem:[%s2857_s0 + $0x170] sm:$0xff]  ;;  %v46_v56 = vld [vmem:[%s2857_s0 + $0x98] sm:$0xff]  ;;  %v76_v58 = vld [vmem:[%s2857_s0 + $0x188] sm:$0xff] }
   0xf   :  { %v47_v59 = vld [vmem:[%s2857_s0 + $0xa0] sm:$0xff]  ;;  %v48_v60 = vld [vmem:[%s2857_s0 + $0xa8] sm:$0xff]  ;;  %v114_v61 = vpack.c.bf16 %v74_v55, %v73_v54  ;;  %v100_v62 = vpack.c.bf16 %v46_v56, %v45_v53  ;;  %v115_v63 = vpack.c.bf16 %v76_v58, %v75_v57  ;;  %v49_v1 = vld [vmem:[%s2857_s0 + $0xb0] sm:$0xff] }
  0x10   :  { %v101_v0 = vpack.c.bf16 %v48_v60, %v47_v59  ;;  %v77_v2 = vld [vmem:[%s2857_s0 + $0x190] sm:$0xff]  ;;  %v78_v3 = vld [vmem:[%s2857_s0 + $0x198] sm:$0xff]  ;;  %v79_v5 = vld [vmem:[%s2857_s0 + $0x1a0] sm:$0xff] }
  0x11   :  { %1879 = vmatpush3.bf16.msra.mxu1 %v746_v49  ;;  %v50_v4 = vld [vmem:[%s2857_s0 + $0xb8] sm:$0xff]  ;;  %v80_v6 = vld [vmem:[%s2857_s0 + $0x1a8] sm:$0xff]  ;;  %v51_v7 = vld [vmem:[%s2857_s0 + $0xc0] sm:$0xff]  ;;  %v116_v9 = vpack.c.bf16 %v78_v3, %v77_v2 }
  0x12   :  { %1817 = vmatmul.mubr.msk.bf16.gmra.mrb[4].mxu0 %vm146_vm0, %v94_v19  ;;  %1849 = vmatmul.mubr.msk.bf16.gmra.mrb[4].mxu1 %vm146_vm0, %v110_v34  ;;  %v52_v8 = vld [vmem:[%s2857_s0 + $0xc8] sm:$0xff]  ;;  %v102_v10 = vpack.c.bf16 %v50_v4, %v49_v1  ;;  %v117_v11 = vpack.c.bf16 %v80_v6, %v79_v5  ;;  %v53_v13 = vld [vmem:[%s2857_s0 + $0xd0] sm:$0xff]  ;;  %v82_v15 = vld [vmem:[%s2857_s0 + $0x1b8] sm:$0xff] }
  0x13   :  { %1820 = vmatprep.mubr.msk.bf16.mxu0 %vm146_vm0, %v95_v24  ;;  %1852 = vmatprep.mubr.msk.bf16.mxu1 %vm146_vm0, %v111_v36  ;;  %v103_v12 = vpack.c.bf16 %v52_v8, %v51_v7  ;;  %v81_v14 = vld [vmem:[%s2857_s0 + $0x1b0] sm:$0xff]  ;;  %v54_v16 = vld [vmem:[%s2857_s0 + $0xd8] sm:$0xff]  ;;  %v83_v17 = vld [vmem:[%s2857_s0 + $0x1c0] sm:$0xff] }
  0x14   :  { %v84_v18 = vld [vmem:[%s2857_s0 + $0x1c8] sm:$0xff]  ;;  %v55_v19 = vld [vmem:[%s2857_s0 + $0xe0] sm:$0xff]  ;;  %v118_v21 = vpack.c.bf16 %v82_v15, %v81_v14  ;;  %v104_v22 = vpack.c.bf16 %v54_v16, %v53_v13  ;;  %v57_v25 = vld [vmem:[%s2857_s0 + $0xf0] sm:$0xff] }
  0x15   :  { %v56_v20 = vld [vmem:[%s2857_s0 + $0xe8] sm:$0xff]  ;;  %v119_v23 = vpack.c.bf16 %v84_v18, %v83_v17  ;;  %v85_v26 = vld [vmem:[%s2857_s0 + $0x1d0] sm:$0xff]  ;;  %v86_v27 = vld [vmem:[%s2857_s0 + $0x1d8] sm:$0xff] }
  0x16   :  { %v105_v24 = vpack.c.bf16 %v56_v20, %v55_v19  ;;  %v58_v28 = vld [vmem:[%s2857_s0 + $0xf8] sm:$0xff]  ;;  %v87_v29 = vld [vmem:[%s2857_s0 + $0x1e0] sm:$0xff]  ;;  %v88_v30 = vld [vmem:[%s2857_s0 + $0x1e8] sm:$0xff]  ;;  %v120_v31 = vpack.c.bf16 %v86_v27, %v85_v26 }
  0x17   :  { %v106_v32 = vpack.c.bf16 %v58_v28, %v57_v25  ;;  %v121_v33 = vpack.c.bf16 %v88_v30, %v87_v29  ;;  %v89_v34 = vld [vmem:[%s2857_s0 + $0x1f0] sm:$0xff]  ;;  %v2019_v46 = vld [vmem:[%s2860_s5] sm:$0xff]  }
  0x18   :  { %1944 = vmatprep.subr.bf16.mxu0 %v2019_v46 }
  0x19   :  { %1945 = vmatpush3.bf16.msra.mxu0 %v2019_v46 }
  0x1a   :  { %1821 = vmatmul.mubr.msk.bf16.gmra.mrb[8].mxu0 %vm146_vm0, %v96_v35  ;;  %1853 = vmatmul.mubr.msk.bf16.gmra.mrb[8].mxu1 %vm146_vm0, %v112_v48  ;;  %v90_v35 = vld [vmem:[%s2857_s0 + $0x1f8] sm:$0xff] }
  0x1b   :  { %1824 = vmatprep.mubr.msk.bf16.mxu0 %vm146_vm0, %v97_v37  ;;  %1856 = vmatprep.mubr.msk.bf16.mxu1 %vm146_vm0, %v113_v51  ;;  %v122_v36 = vpack.c.bf16 %v90_v35, %v89_v34  ;;  %v2299_v37 = vld [vmem:[%s2859_s2] ss:$0 sm:$0xff] }
  0x22   :  { %1825 = vmatmul.mubr.msk.bf16.gmra.mrb[12].mxu0 %vm146_vm0, %v98_v50  ;;  %1857 = vmatmul.mubr.msk.bf16.gmra.mrb[12].mxu1 %vm146_vm0, %v114_v61 }
  0x23   :  { %1828 = vmatprep.mubr.msk.bf16.mxu0 %vm146_vm0, %v99_v52  ;;  %1860 = vmatprep.mubr.msk.bf16.mxu1 %vm146_vm0, %v115_v63 }
  0x2a   :  { %1829 = vmatmul.mubr.msk.bf16.gmra.mrb[16].mxu0 %vm146_vm0, %v100_v62  ;;  %1861 = vmatmul.mubr.msk.bf16.gmra.mrb[16].mxu1 %vm146_vm0, %v116_v9 }
  0x2b   :  { %1832 = vmatprep.mubr.msk.bf16.mxu0 %vm146_vm0, %v101_v0  ;;  %1864 = vmatprep.mubr.msk.bf16.mxu1 %vm146_vm0, %v117_v11 }
  0x32   :  { %1833 = vmatmul.mubr.msk.bf16.gmra.mrb[20].mxu0 %vm146_vm0, %v102_v10  ;;  %1865 = vmatmul.mubr.msk.bf16.gmra.mrb[20].mxu1 %vm146_vm0, %v118_v21 }
  0x33   :  { %1836 = vmatprep.mubr.msk.bf16.mxu0 %vm146_vm0, %v103_v12  ;;  %1868 = vmatprep.mubr.msk.bf16.mxu1 %vm146_vm0, %v119_v23 }
  0x3a   :  { %1837 = vmatmul.mubr.msk.bf16.gmra.mrb[24].mxu0 %vm146_vm0, %v104_v22  ;;  %1869 = vmatmul.mubr.msk.bf16.gmra.mrb[24].mxu1 %vm146_vm0, %v120_v31 }
  0x3b   :  { %1840 = vmatprep.mubr.msk.bf16.mxu0 %vm146_vm0, %v105_v24  ;;  %1872 = vmatprep.mubr.msk.bf16.mxu1 %vm146_vm0, %v121_v33 }
  0x42   :  { %1841 = vmatmul.mubr.msk.bf16.gmra.mrb[28].mxu0 %vm146_vm0, %v106_v32  ;;  %1873 = vmatmul.mubr.msk.bf16.gmra.mrb[28].mxu1 %vm146_vm0, %v122_v36 }
  0xdd   :  { %v1814_v38 = vpop.f32.mrb[0].mxu0  ;;  %v1846_v52 = vpop.f32.mrb[0].mxu1 }
  0xde   :  { %v286_v39 = vadd.f32 %v1814_v38, %v2299_v37  ;;  %v277_v40 = vpop.f32.mrb[1].mxu0  ;;  %v414_v55 = vadd.f32 %v1846_v52, %v2299_v37  ;;  %v405_v56 = vpop.f32.mrb[1].mxu1 }
  0xdf   :  { %v278_v41 = vadd.f32 %v2299_v37, %v277_v40  ;;  %v1815_v42 = vpop.f32.mrb[2].mxu0  ;;  %v406_v59 = vadd.f32 %v2299_v37, %v405_v56  ;;  %v1847_v60 = vpop.f32.mrb[2].mxu1 }
  0xe0   :  { %v289_v43 = vadd.f32 %v1815_v42, %v2299_v37  ;;  %v280_v44 = vpop.f32.mrb[3].mxu0  ;;  %v534_v47 = vmax.f32 %v286_v39, 0.0  ;;  %v566_v63 = vmax.f32 %v414_v55, 0.0  ;;  %v417_v0 = vadd.f32 %v1847_v60, %v2299_v37  ;;  %v408_v1 = vpop.f32.mrb[3].mxu1 }
  0xe1   :  { %v281_v45 = vadd.f32 %v2299_v37, %v280_v44  ;;  %v532_v49 = vmax.f32 %v278_v41, 0.0  ;;  %v564_v4 = vmax.f32 %v406_v59, 0.0  ;;  %v409_v5 = vadd.f32 %v2299_v37, %v408_v1 }
  0xe2   :  { %v535_v48 = vmax.f32 %v289_v43, 0.0  ;;  %v567_v7 = vmax.f32 %v417_v0, 0.0 }
  0xe3   :  { %v533_v50 = vmax.f32 %v281_v45, 0.0  ;;  %v565_v10 = vmax.f32 %v409_v5, 0.0 }
  0xe4   :  { %v597_v51 = vpack.c.bf16 %v535_v48, %v534_v47  ;;  %v2318_v13 = vpack.c.bf16 %v567_v7, %v566_v63 }
  0xe5   :  { %v596_v53 = vpack.c.bf16 %v533_v50, %v532_v49  ;;  %v1818_v54 = vpop.f32.mrb[4].mxu0  ;;  %v2320_v15 = vpack.c.bf16 %v565_v10, %v564_v4  ;;  %v1850_v16 = vpop.f32.mrb[4].mxu1 }
  0xe6   :  { %v302_v57 = vadd.f32 %v1818_v54, %v2299_v37  ;;  %v293_v58 = vpop.f32.mrb[5].mxu0  ;;  %v430_v19 = vadd.f32 %v1850_v16, %v2299_v37  ;;  %v421_v20 = vpop.f32.mrb[5].mxu1 }
  0xe7   :  { %v294_v61 = vadd.f32 %v2299_v37, %v293_v58  ;;  %v1819_v62 = vpop.f32.mrb[6].mxu0  ;;  %1880 = vmatprep.mubr.msk.bf16.mxu1 %vm647_vm2, %v596_v53  ;;  %v422_v23 = vadd.f32 %v2299_v37, %v421_v20  ;;  %v1851_v24 = vpop.f32.mrb[6].mxu1 }
  0xe8   :  { %v305_v2 = vadd.f32 %v1819_v62, %v2299_v37  ;;  %v296_v3 = vpop.f32.mrb[7].mxu0  ;;  %1881 = vmatmul.mubr.msk.bf16.vlgmr.msra.gmra.mrb[32].mxu1 %vm647_vm2, %v597_v51  ;;  %v538_v8 = vmax.f32 %v302_v57, 0.0  ;;  %v570_v27 = vmax.f32 %v430_v19, 0.0  ;;  %v433_v28 = vadd.f32 %v1851_v24, %v2299_v37  ;;  %v424_v29 = vpop.f32.mrb[7].mxu1 }
  0xe9   :  { %v297_v6 = vadd.f32 %v2299_v37, %v296_v3  ;;  %v536_v11 = vmax.f32 %v294_v61, 0.0  ;;  %v568_v32 = vmax.f32 %v422_v23, 0.0  ;;  %v425_v33 = vadd.f32 %v2299_v37, %v424_v29 }
  0xea   :  { %v539_v9 = vmax.f32 %v305_v2, 0.0  ;;  %v571_v35 = vmax.f32 %v433_v28, 0.0 }
  0xeb   :  { %v537_v12 = vmax.f32 %v297_v6, 0.0  ;;  %v569_v39 = vmax.f32 %v425_v33, 0.0 }
  0xec   :  { %v599_v14 = vpack.c.bf16 %v539_v9, %v538_v8  ;;  %v2332_v42 = vpack.c.bf16 %v571_v35, %v570_v27 }
  0xed   :  { %v598_v17 = vpack.c.bf16 %v537_v12, %v536_v11  ;;  %v1822_v18 = vpop.f32.mrb[8].mxu0  ;;  %v2334_v44 = vpack.c.bf16 %v569_v39, %v568_v32  ;;  %v1854_v45 = vpop.f32.mrb[8].mxu1 }
  0xee   :  { %v318_v21 = vadd.f32 %v1822_v18, %v2299_v37  ;;  %v309_v22 = vpop.f32.mrb[9].mxu0  ;;  %v446_v48 = vadd.f32 %v1854_v45, %v2299_v37  ;;  %v437_v49 = vpop.f32.mrb[9].mxu1 }
  0xef   :  { %v310_v25 = vadd.f32 %v2299_v37, %v309_v22  ;;  %v1823_v26 = vpop.f32.mrb[10].mxu0  ;;  %1884 = vmatprep.mubr.msk.bf16.mxu1 %vm647_vm2, %v598_v17  ;;  %v438_v52 = vadd.f32 %v2299_v37, %v437_v49  ;;  %v1855_v53 = vpop.f32.mrb[10].mxu1 }
  0xf0   :  { %v321_v30 = vadd.f32 %v1823_v26, %v2299_v37  ;;  %v312_v31 = vpop.f32.mrb[11].mxu0  ;;  %1885 = vmatmul.mubr.msk.bf16.gmra.mrb[36].mxu1 %vm647_vm2, %v599_v14  ;;  %v542_v36 = vmax.f32 %v318_v21, 0.0  ;;  %v574_v56 = vmax.f32 %v446_v48, 0.0  ;;  %v449_v57 = vadd.f32 %v1855_v53, %v2299_v37  ;;  %v440_v58 = vpop.f32.mrb[11].mxu1 }
  0xf1   :  { %v313_v34 = vadd.f32 %v2299_v37, %v312_v31  ;;  %v540_v40 = vmax.f32 %v310_v25, 0.0  ;;  %v572_v61 = vmax.f32 %v438_v52, 0.0  ;;  %v441_v62 = vadd.f32 %v2299_v37, %v440_v58 }
  0xf2   :  { %v543_v38 = vmax.f32 %v321_v30, 0.0  ;;  %v575_v0 = vmax.f32 %v449_v57, 0.0 }
  0xf3   :  { %v541_v41 = vmax.f32 %v313_v34, 0.0  ;;  %v573_v3 = vmax.f32 %v441_v62, 0.0 }
  0xf4   :  { %v601_v43 = vpack.c.bf16 %v543_v38, %v542_v36  ;;  %v2346_v6 = vpack.c.bf16 %v575_v0, %v574_v56 }
  0xf5   :  { %v600_v46 = vpack.c.bf16 %v541_v41, %v540_v40  ;;  %v1826_v47 = vpop.f32.mrb[12].mxu0  ;;  %v2348_v8 = vpack.c.bf16 %v573_v3, %v572_v61  ;;  %v1858_v9 = vpop.f32.mrb[12].mxu1 }
  0xf6   :  { %v334_v50 = vadd.f32 %v1826_v47, %v2299_v37  ;;  %v325_v51 = vpop.f32.mrb[13].mxu0  ;;  %v462_v12 = vadd.f32 %v1858_v9, %v2299_v37  ;;  %v453_v14 = vpop.f32.mrb[13].mxu1 }
  0xf7   :  { %v326_v54 = vadd.f32 %v2299_v37, %v325_v51  ;;  %v1827_v55 = vpop.f32.mrb[14].mxu0  ;;  %1888 = vmatprep.mubr.msk.bf16.mxu1 %vm647_vm2, %v600_v46  ;;  %v454_v18 = vadd.f32 %v2299_v37, %v453_v14  ;;  %v1859_v19 = vpop.f32.mrb[14].mxu1 }
  0xf8   :  { %v337_v59 = vadd.f32 %v1827_v55, %v2299_v37  ;;  %v328_v60 = vpop.f32.mrb[15].mxu0  ;;  %1889 = vmatmul.mubr.msk.bf16.gmra.mrb[40].mxu1 %vm647_vm2, %v601_v43  ;;  %v546_v1 = vmax.f32 %v334_v50, 0.0  ;;  %v578_v22 = vmax.f32 %v462_v12, 0.0  ;;  %v465_v23 = vadd.f32 %v1859_v19, %v2299_v37  ;;  %v456_v24 = vpop.f32.mrb[15].mxu1 }
  0xf9   :  { %v329_v63 = vadd.f32 %v2299_v37, %v328_v60  ;;  %v544_v4 = vmax.f32 %v326_v54, 0.0  ;;  %v576_v27 = vmax.f32 %v454_v18, 0.0  ;;  %v457_v28 = vadd.f32 %v2299_v37, %v456_v24 }
  0xfa   :  { %v547_v2 = vmax.f32 %v337_v59, 0.0  ;;  %v579_v30 = vmax.f32 %v465_v23, 0.0 }
  0xfb   :  { %v545_v5 = vmax.f32 %v329_v63, 0.0  ;;  %v577_v33 = vmax.f32 %v457_v28, 0.0 }
  0xfc   :  { %v603_v7 = vpack.c.bf16 %v547_v2, %v546_v1  ;;  %v2360_v36 = vpack.c.bf16 %v579_v30, %v578_v22 }
  0xfd   :  { %v602_v10 = vpack.c.bf16 %v545_v5, %v544_v4  ;;  %v1830_v11 = vpop.f32.mrb[16].mxu0  ;;  %v2362_v39 = vpack.c.bf16 %v577_v33, %v576_v27  ;;  %v1862_v40 = vpop.f32.mrb[16].mxu1 }
  0xfe   :  { %v350_v16 = vadd.f32 %v1830_v11, %v2299_v37  ;;  %v341_v17 = vpop.f32.mrb[17].mxu0  ;;  %v478_v45 = vadd.f32 %v1862_v40, %v2299_v37  ;;  %v469_v46 = vpop.f32.mrb[17].mxu1 }
  0xff   :  { %v342_v20 = vadd.f32 %v2299_v37, %v341_v17  ;;  %v1831_v21 = vpop.f32.mrb[18].mxu0  ;;  %1892 = vmatprep.mubr.msk.bf16.mxu1 %vm647_vm2, %v602_v10  ;;  %v470_v49 = vadd.f32 %v2299_v37, %v469_v46  ;;  %v1863_v50 = vpop.f32.mrb[18].mxu1 }
 0x100   :  { %v353_v25 = vadd.f32 %v1831_v21, %v2299_v37  ;;  %v344_v26 = vpop.f32.mrb[19].mxu0  ;;  %1893 = vmatmul.mubr.msk.bf16.gmra.mrb[44].mxu1 %vm647_vm2, %v603_v7  ;;  %v550_v31 = vmax.f32 %v350_v16, 0.0  ;;  %v582_v53 = vmax.f32 %v478_v45, 0.0  ;;  %v481_v54 = vadd.f32 %v1863_v50, %v2299_v37  ;;  %v472_v55 = vpop.f32.mrb[19].mxu1 }
 0x101   :  { %v345_v29 = vadd.f32 %v2299_v37, %v344_v26  ;;  %v548_v34 = vmax.f32 %v342_v20, 0.0  ;;  %v580_v58 = vmax.f32 %v470_v49, 0.0  ;;  %v473_v59 = vadd.f32 %v2299_v37, %v472_v55 }
 0x102   :  { %v551_v32 = vmax.f32 %v353_v25, 0.0  ;;  %v583_v61 = vmax.f32 %v481_v54, 0.0 }
 0x103   :  { %v549_v35 = vmax.f32 %v345_v29, 0.0  ;;  %v581_v0 = vmax.f32 %v473_v59, 0.0 }
 0x104   :  { %v605_v38 = vpack.c.bf16 %v551_v32, %v550_v31  ;;  %v2374_v3 = vpack.c.bf16 %v583_v61, %v582_v53 }
 0x105   :  { %v604_v41 = vpack.c.bf16 %v549_v35, %v548_v34  ;;  %v1834_v43 = vpop.f32.mrb[20].mxu0  ;;  %v2376_v5 = vpack.c.bf16 %v581_v0, %v580_v58  ;;  %v1866_v7 = vpop.f32.mrb[20].mxu1 }
 0x106   :  { %v366_v47 = vadd.f32 %v1834_v43, %v2299_v37  ;;  %v357_v48 = vpop.f32.mrb[21].mxu0  ;;  %v494_v11 = vadd.f32 %v1866_v7, %v2299_v37  ;;  %v485_v12 = vpop.f32.mrb[21].mxu1 }
 0x107   :  { %v358_v51 = vadd.f32 %v2299_v37, %v357_v48  ;;  %v1835_v52 = vpop.f32.mrb[22].mxu0  ;;  %1896 = vmatprep.mubr.msk.bf16.mxu1 %vm647_vm2, %v604_v41  ;;  %v486_v17 = vadd.f32 %v2299_v37, %v485_v12  ;;  %v1867_v18 = vpop.f32.mrb[22].mxu1 }
 0x108   :  { %v369_v56 = vadd.f32 %v1835_v52, %v2299_v37  ;;  %v360_v57 = vpop.f32.mrb[23].mxu0  ;;  %1897 = vmatmul.mubr.msk.bf16.gmra.mrb[48].mxu1 %vm647_vm2, %v605_v38  ;;  %v554_v62 = vmax.f32 %v366_v47, 0.0  ;;  %v586_v21 = vmax.f32 %v494_v11, 0.0  ;;  %v497_v22 = vadd.f32 %v1867_v18, %v2299_v37  ;;  %v488_v23 = vpop.f32.mrb[23].mxu1 }
 0x109   :  { %v361_v60 = vadd.f32 %v2299_v37, %v360_v57  ;;  %v552_v1 = vmax.f32 %v358_v51, 0.0  ;;  %v584_v26 = vmax.f32 %v486_v17, 0.0  ;;  %v489_v27 = vadd.f32 %v2299_v37, %v488_v23 }
 0x10a   :  { %v555_v63 = vmax.f32 %v369_v56, 0.0  ;;  %v587_v29 = vmax.f32 %v497_v22, 0.0 }
 0x10b   :  { %v553_v2 = vmax.f32 %v361_v60, 0.0  ;;  %v585_v32 = vmax.f32 %v489_v27, 0.0 }
 0x10c   :  { %v607_v4 = vpack.c.bf16 %v555_v63, %v554_v62  ;;  %v623_v35 = vpack.c.bf16 %v587_v29, %v586_v21 }
 0x10d   :  { %v606_v9 = vpack.c.bf16 %v553_v2, %v552_v1  ;;  %v1838_v10 = vpop.f32.mrb[24].mxu0  ;;  %v622_v40 = vpack.c.bf16 %v585_v32, %v584_v26  ;;  %v1870_v41 = vpop.f32.mrb[24].mxu1 }
 0x10e   :  { %v382_v14 = vadd.f32 %v1838_v10, %v2299_v37  ;;  %v373_v16 = vpop.f32.mrb[25].mxu0  ;;  %v510_v46 = vadd.f32 %v1870_v41, %v2299_v37  ;;  %v501_v47 = vpop.f32.mrb[25].mxu1 }
 0x10f   :  { %v374_v19 = vadd.f32 %v2299_v37, %v373_v16  ;;  %v1839_v20 = vpop.f32.mrb[26].mxu0  ;;  %1900 = vmatprep.mubr.msk.bf16.mxu1 %vm647_vm2, %v606_v9  ;;  %v502_v50 = vadd.f32 %v2299_v37, %v501_v47  ;;  %v1871_v51 = vpop.f32.mrb[26].mxu1 }
 0x110   :  { %v385_v24 = vadd.f32 %v1839_v20, %v2299_v37  ;;  %v376_v25 = vpop.f32.mrb[27].mxu0  ;;  %1901 = vmatmul.mubr.msk.bf16.gmra.mrb[52].mxu1 %vm647_vm2, %v607_v4  ;;  %v558_v30 = vmax.f32 %v382_v14, 0.0  ;;  %v590_v54 = vmax.f32 %v510_v46, 0.0  ;;  %v513_v55 = vadd.f32 %v1871_v51, %v2299_v37  ;;  %v504_v56 = vpop.f32.mrb[27].mxu1 }
 0x111   :  { %v377_v28 = vadd.f32 %v2299_v37, %v376_v25  ;;  %v556_v33 = vmax.f32 %v374_v19, 0.0  ;;  %v588_v59 = vmax.f32 %v502_v50, 0.0  ;;  %v505_v60 = vadd.f32 %v2299_v37, %v504_v56 }
 0x112   :  { %v559_v31 = vmax.f32 %v385_v24, 0.0  ;;  %v591_v62 = vmax.f32 %v513_v55, 0.0 }
 0x113   :  { %v557_v34 = vmax.f32 %v377_v28, 0.0  ;;  %v589_v1 = vmax.f32 %v505_v60, 0.0 }
 0x114   :  { %v609_v38 = vpack.c.bf16 %v559_v31, %v558_v30  ;;  %v625_v7 = vpack.c.bf16 %v591_v62, %v590_v54 }
 0x115   :  { %v608_v43 = vpack.c.bf16 %v557_v34, %v556_v33  ;;  %v1842_v45 = vpop.f32.mrb[28].mxu0  ;;  %v624_v10 = vpack.c.bf16 %v589_v1, %v588_v59  ;;  %v1874_v11 = vpop.f32.mrb[28].mxu1 }
 0x116   :  { %v398_v48 = vadd.f32 %v1842_v45, %v2299_v37  ;;  %v389_v49 = vpop.f32.mrb[29].mxu0  ;;  %v526_v14 = vadd.f32 %v1874_v11, %v2299_v37  ;;  %v517_v16 = vpop.f32.mrb[29].mxu1 }
 0x117   :  { %v390_v52 = vadd.f32 %v2299_v37, %v389_v49  ;;  %v1843_v53 = vpop.f32.mrb[30].mxu0  ;;  %1904 = vmatprep.mubr.msk.bf16.mxu1 %vm647_vm2, %v608_v43  ;;  %v518_v17 = vadd.f32 %v2299_v37, %v517_v16  ;;  %v1875_v18 = vpop.f32.mrb[30].mxu1 }
 0x118   :  { %v401_v57 = vadd.f32 %v1843_v53, %v2299_v37  ;;  %v392_v58 = vpop.f32.mrb[31].mxu0  ;;  %1905 = vmatmul.mubr.msk.bf16.gmra.mrb[56].mxu1 %vm647_vm2, %v609_v38  ;;  %v562_v63 = vmax.f32 %v398_v48, 0.0  ;;  %v594_v19 = vmax.f32 %v526_v14, 0.0  ;;  %v529_v20 = vadd.f32 %v1875_v18, %v2299_v37  ;;  %v520_v21 = vpop.f32.mrb[31].mxu1 }
 0x119   :  { %v393_v61 = vadd.f32 %v2299_v37, %v392_v58  ;;  %v560_v2 = vmax.f32 %v390_v52, 0.0  ;;  %v592_v22 = vmax.f32 %v518_v17, 0.0  ;;  %v521_v23 = vadd.f32 %v2299_v37, %v520_v21  ;;  %v2433_v37 = vld [vmem:[%s2861_s4] ss:$0 sm:$0xff] }
 0x11a   :  { %v563_v0 = vmax.f32 %v401_v57, 0.0  ;;  %v595_v24 = vmax.f32 %v529_v20, 0.0 }
 0x11b   :  { %v561_v4 = vmax.f32 %v393_v61, 0.0  ;;  %v593_v25 = vmax.f32 %v521_v23, 0.0 }
 0x11c   :  { %v611_v9 = vpack.c.bf16 %v563_v0, %v562_v63  ;;  %v627_v26 = vpack.c.bf16 %v595_v24, %v594_v19 }
 0x11d   :  { %v610_v12 = vpack.c.bf16 %v561_v4, %v560_v2  ;;  %v626_v27 = vpack.c.bf16 %v593_v25, %v592_v22 }
 0x11f   :  { %1908 = vmatprep.mubr.msk.bf16.mxu1 %vm647_vm2, %v610_v12 }
 0x120   :  { %1909 = vmatmul.mubr.msk.bf16.gmra.mrb[60].mxu1 %vm647_vm2, %v611_v9 }
 0x121   :  { %1912 = vmatprep.mubr.msk.bf16.mxu1 %vm647_vm2, %v2320_v15 }
 0x128   :  { %1913 = vmatmul.mubr.msk.bf16.gmra.mrb[64].mxu1 %vm647_vm2, %v2318_v13 }
 0x129   :  { %1916 = vmatprep.mubr.msk.bf16.mxu1 %vm647_vm2, %v2334_v44 }
 0x130   :  { %1917 = vmatmul.mubr.msk.bf16.gmra.mrb[68].mxu1 %vm647_vm2, %v2332_v42 }
 0x131   :  { %1920 = vmatprep.mubr.msk.bf16.mxu1 %vm647_vm2, %v2348_v8 }
 0x138   :  { %1921 = vmatmul.mubr.msk.bf16.gmra.mrb[72].mxu1 %vm647_vm2, %v2346_v6 }
 0x139   :  { %1924 = vmatprep.mubr.msk.bf16.mxu1 %vm647_vm2, %v2362_v39 }
 0x140   :  { %1925 = vmatmul.mubr.msk.bf16.gmra.mrb[76].mxu1 %vm647_vm2, %v2360_v36 }
 0x141   :  { %1928 = vmatprep.mubr.msk.bf16.mxu1 %vm647_vm2, %v2376_v5 }
 0x148   :  { %1929 = vmatmul.mubr.msk.bf16.gmra.mrb[80].mxu1 %vm647_vm2, %v2374_v3 }
 0x149   :  { %1932 = vmatprep.mubr.msk.bf16.mxu1 %vm647_vm2, %v622_v40 }
 0x150   :  { %1933 = vmatmul.mubr.msk.bf16.gmra.mrb[84].mxu1 %vm647_vm2, %v623_v35 }
 0x151   :  { %1936 = vmatprep.mubr.msk.bf16.mxu1 %vm647_vm2, %v624_v10 }
 0x158   :  { %1937 = vmatmul.mubr.msk.bf16.gmra.mrb[88].mxu1 %vm647_vm2, %v625_v7 }
 0x159   :  { %1940 = vmatprep.mubr.msk.bf16.mxu1 %vm647_vm2, %v626_v27 }
 0x160   :  { %1941 = vmatmul.mubr.msk.bf16.gmra.mrb[92].mxu1 %vm647_vm2, %v627_v26 }
 0x1bb   :  { %v1882_v13 = vpop.f32.mrb[32].mxu1 }
 0x1bc   :  { %v791_v15 = vadd.f32 %v1882_v13, %v2433_v37  ;;  %v782_v42 = vpop.f32.mrb[33].mxu1 }
 0x1bd   :  { %v783_v44 = vadd.f32 %v2433_v37, %v782_v42  ;;  %v1883_v6 = vpop.f32.mrb[34].mxu1 }
 0x1be   :  { %v794_v8 = vadd.f32 %v1883_v6, %v2433_v37  ;;  %v785_v36 = vpop.f32.mrb[35].mxu1  ;;  %v1039_v3 = vmax.f32 %v791_v15, 0.0 }
 0x1bf   :  { %v786_v39 = vadd.f32 %v2433_v37, %v785_v36  ;;  %v1037_v28 = vmax.f32 %v783_v44, 0.0 }
 0x1c0   :  { %v1040_v5 = vmax.f32 %v794_v8, 0.0 }
 0x1c1   :  { %v1038_v29 = vmax.f32 %v786_v39, 0.0 }
 0x1c2   :  { %v1102_v30 = vpack.c.bf16 %v1040_v5, %v1039_v3 }
 0x1c3   :  { %v1101_v31 = vpack.c.bf16 %v1038_v29, %v1037_v28  ;;  %v1886_v32 = vpop.f32.mrb[36].mxu1 }
 0x1c4   :  { %v807_v33 = vadd.f32 %v1886_v32, %v2433_v37  ;;  %v798_v34 = vpop.f32.mrb[37].mxu1 }
 0x1c5   :  { %v799_v35 = vadd.f32 %v2433_v37, %v798_v34  ;;  %v1887_v38 = vpop.f32.mrb[38].mxu1  ;;  %1946 = vmatprep.mubr.msk.bf16.mxu0 %vm1148_vm3, %v1101_v31 }
 0x1c6   :  { %v810_v40 = vadd.f32 %v1887_v38, %v2433_v37  ;;  %v801_v41 = vpop.f32.mrb[39].mxu1  ;;  %1947 = vmatmul.mubr.msk.bf16.vlgmr.msra.gmra.mrb[32].mxu0 %vm1148_vm3, %v1102_v30  ;;  %v1043_v45 = vmax.f32 %v807_v33, 0.0 }
 0x1c7   :  { %v802_v43 = vadd.f32 %v2433_v37, %v801_v41  ;;  %v1041_v47 = vmax.f32 %v799_v35, 0.0 }
 0x1c8   :  { %v1044_v46 = vmax.f32 %v810_v40, 0.0 }
 0x1c9   :  { %v1042_v48 = vmax.f32 %v802_v43, 0.0 }
 0x1ca   :  { %v1104_v49 = vpack.c.bf16 %v1044_v46, %v1043_v45 }
 0x1cb   :  { %v1103_v50 = vpack.c.bf16 %v1042_v48, %v1041_v47  ;;  %v1890_v51 = vpop.f32.mrb[40].mxu1 }
 0x1cc   :  { %v823_v52 = vadd.f32 %v1890_v51, %v2433_v37  ;;  %v814_v53 = vpop.f32.mrb[41].mxu1 }
 0x1cd   :  { %v815_v54 = vadd.f32 %v2433_v37, %v814_v53  ;;  %v1891_v55 = vpop.f32.mrb[42].mxu1  ;;  %1950 = vmatprep.mubr.msk.bf16.mxu0 %vm1148_vm3, %v1103_v50 }
 0x1ce   :  { %v826_v56 = vadd.f32 %v1891_v55, %v2433_v37  ;;  %v817_v57 = vpop.f32.mrb[43].mxu1  ;;  %1951 = vmatmul.mubr.msk.bf16.gmra.mrb[36].mxu0 %vm1148_vm3, %v1104_v49  ;;  %v1047_v59 = vmax.f32 %v823_v52, 0.0 }
 0x1cf   :  { %v818_v58 = vadd.f32 %v2433_v37, %v817_v57  ;;  %v1045_v61 = vmax.f32 %v815_v54, 0.0 }
 0x1d0   :  { %v1048_v60 = vmax.f32 %v826_v56, 0.0 }
 0x1d1   :  { %v1046_v62 = vmax.f32 %v818_v58, 0.0 }
 0x1d2   :  { %v1106_v63 = vpack.c.bf16 %v1048_v60, %v1047_v59 }
 0x1d3   :  { %v1105_v0 = vpack.c.bf16 %v1046_v62, %v1045_v61  ;;  %v1894_v1 = vpop.f32.mrb[44].mxu1 }
 0x1d4   :  { %v839_v2 = vadd.f32 %v1894_v1, %v2433_v37  ;;  %v830_v4 = vpop.f32.mrb[45].mxu1 }
 0x1d5   :  { %v831_v7 = vadd.f32 %v2433_v37, %v830_v4  ;;  %v1895_v9 = vpop.f32.mrb[46].mxu1  ;;  %1954 = vmatprep.mubr.msk.bf16.mxu0 %vm1148_vm3, %v1105_v0 }
 0x1d6   :  { %v842_v10 = vadd.f32 %v1895_v9, %v2433_v37  ;;  %v833_v11 = vpop.f32.mrb[47].mxu1  ;;  %1955 = vmatmul.mubr.msk.bf16.gmra.mrb[40].mxu0 %vm1148_vm3, %v1106_v63  ;;  %v1051_v14 = vmax.f32 %v839_v2, 0.0 }
 0x1d7   :  { %v834_v12 = vadd.f32 %v2433_v37, %v833_v11  ;;  %v1049_v17 = vmax.f32 %v831_v7, 0.0 }
 0x1d8   :  { %v1052_v16 = vmax.f32 %v842_v10, 0.0 }
 0x1d9   :  { %v1050_v18 = vmax.f32 %v834_v12, 0.0 }
 0x1da   :  { %v1108_v19 = vpack.c.bf16 %v1052_v16, %v1051_v14 }
 0x1db   :  { %v1107_v20 = vpack.c.bf16 %v1050_v18, %v1049_v17  ;;  %v1898_v21 = vpop.f32.mrb[48].mxu1 }
 0x1dc   :  { %v855_v22 = vadd.f32 %v1898_v21, %v2433_v37  ;;  %v846_v23 = vpop.f32.mrb[49].mxu1 }
 0x1dd   :  { %v847_v24 = vadd.f32 %v2433_v37, %v846_v23  ;;  %v1899_v25 = vpop.f32.mrb[50].mxu1  ;;  %1958 = vmatprep.mubr.msk.bf16.mxu0 %vm1148_vm3, %v1107_v20 }
 0x1de   :  { %v858_v26 = vadd.f32 %v1899_v25, %v2433_v37  ;;  %v849_v27 = vpop.f32.mrb[51].mxu1  ;;  %1959 = vmatmul.mubr.msk.bf16.gmra.mrb[44].mxu0 %vm1148_vm3, %v1108_v19  ;;  %v1055_v15 = vmax.f32 %v855_v22, 0.0 }
 0x1df   :  { %v850_v13 = vadd.f32 %v2433_v37, %v849_v27  ;;  %v1053_v44 = vmax.f32 %v847_v24, 0.0 }
 0x1e0   :  { %v1056_v42 = vmax.f32 %v858_v26, 0.0 }
 0x1e1   :  { %v1054_v6 = vmax.f32 %v850_v13, 0.0 }
 0x1e2   :  { %v1110_v8 = vpack.c.bf16 %v1056_v42, %v1055_v15 }
 0x1e3   :  { %v1109_v36 = vpack.c.bf16 %v1054_v6, %v1053_v44  ;;  %v1902_v39 = vpop.f32.mrb[52].mxu1 }
 0x1e4   :  { %v871_v3 = vadd.f32 %v1902_v39, %v2433_v37  ;;  %v862_v5 = vpop.f32.mrb[53].mxu1 }
 0x1e5   :  { %v863_v28 = vadd.f32 %v2433_v37, %v862_v5  ;;  %v1903_v29 = vpop.f32.mrb[54].mxu1  ;;  %1962 = vmatprep.mubr.msk.bf16.mxu0 %vm1148_vm3, %v1109_v36 }
 0x1e6   :  { %v874_v30 = vadd.f32 %v1903_v29, %v2433_v37  ;;  %v865_v31 = vpop.f32.mrb[55].mxu1  ;;  %1963 = vmatmul.mubr.msk.bf16.gmra.mrb[48].mxu0 %vm1148_vm3, %v1110_v8  ;;  %v1059_v33 = vmax.f32 %v871_v3, 0.0 }
 0x1e7   :  { %v866_v32 = vadd.f32 %v2433_v37, %v865_v31  ;;  %v1057_v35 = vmax.f32 %v863_v28, 0.0 }
 0x1e8   :  { %v1060_v34 = vmax.f32 %v874_v30, 0.0 }
 0x1e9   :  { %v1058_v38 = vmax.f32 %v866_v32, 0.0 }
 0x1ea   :  { %v1112_v40 = vpack.c.bf16 %v1060_v34, %v1059_v33 }
 0x1eb   :  { %v1111_v41 = vpack.c.bf16 %v1058_v38, %v1057_v35  ;;  %v1906_v43 = vpop.f32.mrb[56].mxu1 }
 0x1ec   :  { %v887_v45 = vadd.f32 %v1906_v43, %v2433_v37  ;;  %v878_v46 = vpop.f32.mrb[57].mxu1 }
 0x1ed   :  { %v879_v47 = vadd.f32 %v2433_v37, %v878_v46  ;;  %v1907_v48 = vpop.f32.mrb[58].mxu1  ;;  %1966 = vmatprep.mubr.msk.bf16.mxu0 %vm1148_vm3, %v1111_v41 }
 0x1ee   :  { %v890_v49 = vadd.f32 %v1907_v48, %v2433_v37  ;;  %v881_v50 = vpop.f32.mrb[59].mxu1  ;;  %1967 = vmatmul.mubr.msk.bf16.gmra.mrb[52].mxu0 %vm1148_vm3, %v1112_v40  ;;  %v1063_v52 = vmax.f32 %v887_v45, 0.0 }
 0x1ef   :  { %v882_v51 = vadd.f32 %v2433_v37, %v881_v50  ;;  %v1061_v54 = vmax.f32 %v879_v47, 0.0 }
 0x1f0   :  { %v1064_v53 = vmax.f32 %v890_v49, 0.0 }
 0x1f1   :  { %v1062_v55 = vmax.f32 %v882_v51, 0.0 }
 0x1f2   :  { %v1114_v56 = vpack.c.bf16 %v1064_v53, %v1063_v52 }
 0x1f3   :  { %v1113_v57 = vpack.c.bf16 %v1062_v55, %v1061_v54  ;;  %v1910_v58 = vpop.f32.mrb[60].mxu1 }
 0x1f4   :  { %v903_v59 = vadd.f32 %v1910_v58, %v2433_v37  ;;  %v894_v60 = vpop.f32.mrb[61].mxu1 }
 0x1f5   :  { %v895_v61 = vadd.f32 %v2433_v37, %v894_v60  ;;  %v1911_v62 = vpop.f32.mrb[62].mxu1  ;;  %1970 = vmatprep.mubr.msk.bf16.mxu0 %vm1148_vm3, %v1113_v57 }
 0x1f6   :  { %v906_v63 = vadd.f32 %v1911_v62, %v2433_v37  ;;  %v897_v0 = vpop.f32.mrb[63].mxu1  ;;  %1971 = vmatmul.mubr.msk.bf16.gmra.mrb[56].mxu0 %vm1148_vm3, %v1114_v56  ;;  %v1067_v2 = vmax.f32 %v903_v59, 0.0 }
 0x1f7   :  { %v898_v1 = vadd.f32 %v2433_v37, %v897_v0  ;;  %v1065_v7 = vmax.f32 %v895_v61, 0.0 }
 0x1f8   :  { %v1068_v4 = vmax.f32 %v906_v63, 0.0 }
 0x1f9   :  { %v1066_v9 = vmax.f32 %v898_v1, 0.0 }
 0x1fa   :  { %v1116_v10 = vpack.c.bf16 %v1068_v4, %v1067_v2 }
 0x1fb   :  { %v1115_v11 = vpack.c.bf16 %v1066_v9, %v1065_v7  ;;  %v1914_v12 = vpop.f32.mrb[64].mxu1 }
 0x1fc   :  { %v919_v14 = vadd.f32 %v1914_v12, %v2433_v37  ;;  %v910_v16 = vpop.f32.mrb[65].mxu1 }
 0x1fd   :  { %v911_v17 = vadd.f32 %v2433_v37, %v910_v16  ;;  %v1915_v18 = vpop.f32.mrb[66].mxu1  ;;  %1974 = vmatprep.mubr.msk.bf16.mxu0 %vm1148_vm3, %v1115_v11 }
 0x1fe   :  { %v922_v19 = vadd.f32 %v1915_v18, %v2433_v37  ;;  %v913_v20 = vpop.f32.mrb[67].mxu1  ;;  %1975 = vmatmul.mubr.msk.bf16.gmra.mrb[60].mxu0 %vm1148_vm3, %v1116_v10  ;;  %v1071_v22 = vmax.f32 %v919_v14, 0.0 }
 0x1ff   :  { %v914_v21 = vadd.f32 %v2433_v37, %v913_v20  ;;  %v1069_v24 = vmax.f32 %v911_v17, 0.0 }
 0x200   :  { %v1072_v23 = vmax.f32 %v922_v19, 0.0 }
 0x201   :  { %v1070_v25 = vmax.f32 %v914_v21, 0.0 }
 0x202   :  { %v1118_v26 = vpack.c.bf16 %v1072_v23, %v1071_v22 }
 0x203   :  { %v1117_v27 = vpack.c.bf16 %v1070_v25, %v1069_v24  ;;  %v1918_v13 = vpop.f32.mrb[68].mxu1 }
 0x204   :  { %v935_v15 = vadd.f32 %v1918_v13, %v2433_v37  ;;  %v926_v42 = vpop.f32.mrb[69].mxu1 }
 0x205   :  { %v927_v44 = vadd.f32 %v2433_v37, %v926_v42  ;;  %v1919_v6 = vpop.f32.mrb[70].mxu1  ;;  %1978 = vmatprep.mubr.msk.bf16.mxu0 %vm1148_vm3, %v1117_v27 }
 0x206   :  { %v938_v8 = vadd.f32 %v1919_v6, %v2433_v37  ;;  %v929_v36 = vpop.f32.mrb[71].mxu1  ;;  %1979 = vmatmul.mubr.msk.bf16.gmra.mrb[64].mxu0 %vm1148_vm3, %v1118_v26  ;;  %v1075_v3 = vmax.f32 %v935_v15, 0.0 }
 0x207   :  { %v930_v39 = vadd.f32 %v2433_v37, %v929_v36  ;;  %v1073_v28 = vmax.f32 %v927_v44, 0.0 }
 0x208   :  { %v1076_v5 = vmax.f32 %v938_v8, 0.0 }
 0x209   :  { %v1074_v29 = vmax.f32 %v930_v39, 0.0 }
 0x20a   :  { %v1120_v30 = vpack.c.bf16 %v1076_v5, %v1075_v3 }
 0x20b   :  { %v1119_v31 = vpack.c.bf16 %v1074_v29, %v1073_v28  ;;  %v1922_v32 = vpop.f32.mrb[72].mxu1 }
 0x20c   :  { %v951_v33 = vadd.f32 %v1922_v32, %v2433_v37  ;;  %v942_v34 = vpop.f32.mrb[73].mxu1 }
 0x20d   :  { %v943_v35 = vadd.f32 %v2433_v37, %v942_v34  ;;  %v1923_v38 = vpop.f32.mrb[74].mxu1  ;;  %1982 = vmatprep.mubr.msk.bf16.mxu0 %vm1148_vm3, %v1119_v31 }
 0x20e   :  { %v954_v40 = vadd.f32 %v1923_v38, %v2433_v37  ;;  %v945_v41 = vpop.f32.mrb[75].mxu1  ;;  %1983 = vmatmul.mubr.msk.bf16.gmra.mrb[68].mxu0 %vm1148_vm3, %v1120_v30  ;;  %v1079_v45 = vmax.f32 %v951_v33, 0.0 }
 0x20f   :  { %v946_v43 = vadd.f32 %v2433_v37, %v945_v41  ;;  %v1077_v47 = vmax.f32 %v943_v35, 0.0 }
 0x210   :  { %v1080_v46 = vmax.f32 %v954_v40, 0.0 }
 0x211   :  { %v1078_v48 = vmax.f32 %v946_v43, 0.0 }
 0x212   :  { %v1122_v49 = vpack.c.bf16 %v1080_v46, %v1079_v45 }
 0x213   :  { %v1121_v50 = vpack.c.bf16 %v1078_v48, %v1077_v47  ;;  %v1926_v51 = vpop.f32.mrb[76].mxu1 }
 0x214   :  { %v967_v52 = vadd.f32 %v1926_v51, %v2433_v37  ;;  %v958_v53 = vpop.f32.mrb[77].mxu1 }
 0x215   :  { %v959_v54 = vadd.f32 %v2433_v37, %v958_v53  ;;  %v1927_v55 = vpop.f32.mrb[78].mxu1  ;;  %1986 = vmatprep.mubr.msk.bf16.mxu0 %vm1148_vm3, %v1121_v50 }
 0x216   :  { %v970_v56 = vadd.f32 %v1927_v55, %v2433_v37  ;;  %v961_v57 = vpop.f32.mrb[79].mxu1  ;;  %1987 = vmatmul.mubr.msk.bf16.gmra.mrb[72].mxu0 %vm1148_vm3, %v1122_v49  ;;  %v1083_v59 = vmax.f32 %v967_v52, 0.0 }
 0x217   :  { %v962_v58 = vadd.f32 %v2433_v37, %v961_v57  ;;  %v1081_v61 = vmax.f32 %v959_v54, 0.0 }
 0x218   :  { %v1084_v60 = vmax.f32 %v970_v56, 0.0 }
 0x219   :  { %v1082_v62 = vmax.f32 %v962_v58, 0.0  ;;  %v2534_v58 = vld [vmem:[%s2862_s6] ss:$0 sm:$0xff] }
 0x21a   :  { %v1124_v63 = vpack.c.bf16 %v1084_v60, %v1083_v59 }
 0x21b   :  { %v1123_v0 = vpack.c.bf16 %v1082_v62, %v1081_v61  ;;  %v1930_v1 = vpop.f32.mrb[80].mxu1 }
 0x21c   :  { %v983_v2 = vadd.f32 %v1930_v1, %v2433_v37  ;;  %v974_v4 = vpop.f32.mrb[81].mxu1 }
 0x21d   :  { %v975_v7 = vadd.f32 %v2433_v37, %v974_v4  ;;  %v1931_v9 = vpop.f32.mrb[82].mxu1  ;;  %1990 = vmatprep.mubr.msk.bf16.mxu0 %vm1148_vm3, %v1123_v0 }
 0x21e   :  { %v986_v10 = vadd.f32 %v1931_v9, %v2433_v37  ;;  %v977_v11 = vpop.f32.mrb[83].mxu1  ;;  %1991 = vmatmul.mubr.msk.bf16.gmra.mrb[76].mxu0 %vm1148_vm3, %v1124_v63  ;;  %v1087_v14 = vmax.f32 %v983_v2, 0.0 }
 0x21f   :  { %v978_v12 = vadd.f32 %v2433_v37, %v977_v11  ;;  %v1085_v17 = vmax.f32 %v975_v7, 0.0 }
 0x220   :  { %v1088_v16 = vmax.f32 %v986_v10, 0.0 }
 0x221   :  { %v1086_v18 = vmax.f32 %v978_v12, 0.0 }
 0x222   :  { %v1126_v19 = vpack.c.bf16 %v1088_v16, %v1087_v14 }
 0x223   :  { %v1125_v20 = vpack.c.bf16 %v1086_v18, %v1085_v17  ;;  %v1934_v21 = vpop.f32.mrb[84].mxu1 }
 0x224   :  { %v999_v22 = vadd.f32 %v1934_v21, %v2433_v37  ;;  %v990_v23 = vpop.f32.mrb[85].mxu1 }
 0x225   :  { %v991_v24 = vadd.f32 %v2433_v37, %v990_v23  ;;  %v1935_v25 = vpop.f32.mrb[86].mxu1  ;;  %1994 = vmatprep.mubr.msk.bf16.mxu0 %vm1148_vm3, %v1125_v20 }
 0x226   :  { %v1002_v26 = vadd.f32 %v1935_v25, %v2433_v37  ;;  %v993_v27 = vpop.f32.mrb[87].mxu1  ;;  %1995 = vmatmul.mubr.msk.bf16.gmra.mrb[80].mxu0 %vm1148_vm3, %v1126_v19  ;;  %v1091_v15 = vmax.f32 %v999_v22, 0.0 }
 0x227   :  { %v994_v13 = vadd.f32 %v2433_v37, %v993_v27  ;;  %v1089_v44 = vmax.f32 %v991_v24, 0.0 }
 0x228   :  { %v1092_v42 = vmax.f32 %v1002_v26, 0.0 }
 0x229   :  { %v1090_v6 = vmax.f32 %v994_v13, 0.0 }
 0x22a   :  { %v1128_v8 = vpack.c.bf16 %v1092_v42, %v1091_v15 }
 0x22b   :  { %v1127_v36 = vpack.c.bf16 %v1090_v6, %v1089_v44  ;;  %v1938_v39 = vpop.f32.mrb[88].mxu1 }
 0x22c   :  { %v1015_v3 = vadd.f32 %v1938_v39, %v2433_v37  ;;  %v1006_v5 = vpop.f32.mrb[89].mxu1 }
 0x22d   :  { %v1007_v28 = vadd.f32 %v2433_v37, %v1006_v5  ;;  %v1939_v29 = vpop.f32.mrb[90].mxu1  ;;  %1998 = vmatprep.mubr.msk.bf16.mxu0 %vm1148_vm3, %v1127_v36 }
 0x22e   :  { %v1018_v30 = vadd.f32 %v1939_v29, %v2433_v37  ;;  %v1009_v31 = vpop.f32.mrb[91].mxu1  ;;  %1999 = vmatmul.mubr.msk.bf16.gmra.mrb[84].mxu0 %vm1148_vm3, %v1128_v8  ;;  %v1095_v33 = vmax.f32 %v1015_v3, 0.0 }
 0x22f   :  { %v1010_v32 = vadd.f32 %v2433_v37, %v1009_v31  ;;  %v1093_v35 = vmax.f32 %v1007_v28, 0.0 }
 0x230   :  { %v1096_v34 = vmax.f32 %v1018_v30, 0.0 }
 0x231   :  { %v1094_v38 = vmax.f32 %v1010_v32, 0.0 }
 0x232   :  { %v1130_v40 = vpack.c.bf16 %v1096_v34, %v1095_v33 }
 0x233   :  { %v1129_v41 = vpack.c.bf16 %v1094_v38, %v1093_v35  ;;  %v1942_v43 = vpop.f32.mrb[92].mxu1 }
 0x234   :  { %v1031_v45 = vadd.f32 %v1942_v43, %v2433_v37  ;;  %v1022_v46 = vpop.f32.mrb[93].mxu1 }
 0x235   :  { %v1023_v47 = vadd.f32 %v2433_v37, %v1022_v46  ;;  %v1943_v48 = vpop.f32.mrb[94].mxu1  ;;  %2002 = vmatprep.mubr.msk.bf16.mxu0 %vm1148_vm3, %v1129_v41 }
 0x236   :  { %v1034_v49 = vadd.f32 %v1943_v48, %v2433_v37  ;;  %v1025_v50 = vpop.f32.mrb[95].mxu1  ;;  %2003 = vmatmul.mubr.msk.bf16.gmra.mrb[88].mxu0 %vm1148_vm3, %v1130_v40  ;;  %v1099_v52 = vmax.f32 %v1031_v45, 0.0 }
 0x237   :  { %v1026_v51 = vadd.f32 %v2433_v37, %v1025_v50  ;;  %v1097_v54 = vmax.f32 %v1023_v47, 0.0 }
 0x238   :  { %v1100_v53 = vmax.f32 %v1034_v49, 0.0 }
 0x239   :  { %v1098_v55 = vmax.f32 %v1026_v51, 0.0 }
 0x23a   :  { %v1132_v56 = vpack.c.bf16 %v1100_v53, %v1099_v52 }
 0x23b   :  { %v1131_v57 = vpack.c.bf16 %v1098_v55, %v1097_v54 }
 0x23d   :  { %2006 = vmatprep.mubr.msk.bf16.mxu0 %vm1148_vm3, %v1131_v57 }
 0x23e   :  { %2007 = vmatmul.mubr.msk.bf16.gmra.mrb[92].mxu0 %vm1148_vm3, %v1132_v56 }
 0x299   :  { %v1948_v59 = vpop.f32.mrb[32].mxu0 }
 0x29a   :  { %v1288_v60 = vadd.f32 %v1948_v59, %v2534_v58  ;;  %v1279_v37 = vpop.f32.mrb[33].mxu0 }
 0x29b   :  { %v1280_v61 = vadd.f32 %v2534_v58, %v1279_v37  ;;  %v1949_v62 = vpop.f32.mrb[34].mxu0 }
 0x29c   :  { %1537 = vst.msk [vmem:[%s2863_s7 + $0x10] sm:$0xff] %vm1534_vm4, %v1288_v60  ;;  %v1291_v63 = vadd.f32 %v1949_v62, %v2534_v58  ;;  %v1282_v0 = vpop.f32.mrb[35].mxu0 }
 0x29d   :  { %1535 = vst.msk [vmem:[%s2863_s7] sm:$0xff] %vm1534_vm4, %v1280_v61  ;;  %v1283_v1 = vadd.f32 %v2534_v58, %v1282_v0 }
 0x29e   :  { %1538 = vst.msk [vmem:[%s2863_s7 + $0x18] sm:$0xff] %vm1534_vm4, %v1291_v63 }
 0x29f   :  { %1536 = vst.msk [vmem:[%s2863_s7 + $0x8] sm:$0xff] %vm1534_vm4, %v1283_v1 }
 0x2a1   :  { %v1952_v2 = vpop.f32.mrb[36].mxu0 }
 0x2a2   :  { %v1304_v4 = vadd.f32 %v1952_v2, %v2534_v58  ;;  %v1295_v7 = vpop.f32.mrb[37].mxu0 }
 0x2a3   :  { %v1296_v9 = vadd.f32 %v2534_v58, %v1295_v7  ;;  %v1953_v10 = vpop.f32.mrb[38].mxu0 }
 0x2a4   :  { %1541 = vst.msk [vmem:[%s2863_s7 + $0x30] sm:$0xff] %vm1534_vm4, %v1304_v4  ;;  %v1307_v11 = vadd.f32 %v1953_v10, %v2534_v58  ;;  %v1298_v12 = vpop.f32.mrb[39].mxu0 }
 0x2a5   :  { %1539 = vst.msk [vmem:[%s2863_s7 + $0x20] sm:$0xff] %vm1534_vm4, %v1296_v9  ;;  %v1299_v14 = vadd.f32 %v2534_v58, %v1298_v12 }
 0x2a6   :  { %1542 = vst.msk [vmem:[%s2863_s7 + $0x38] sm:$0xff] %vm1534_vm4, %v1307_v11 }
 0x2a7   :  { %1540 = vst.msk [vmem:[%s2863_s7 + $0x28] sm:$0xff] %vm1534_vm4, %v1299_v14 }
 0x2a9   :  { %v1956_v16 = vpop.f32.mrb[40].mxu0 }
 0x2aa   :  { %v1320_v17 = vadd.f32 %v1956_v16, %v2534_v58  ;;  %v1311_v18 = vpop.f32.mrb[41].mxu0 }
 0x2ab   :  { %v1312_v19 = vadd.f32 %v2534_v58, %v1311_v18  ;;  %v1957_v20 = vpop.f32.mrb[42].mxu0 }
 0x2ac   :  { %1545 = vst.msk [vmem:[%s2863_s7 + $0x50] sm:$0xff] %vm1534_vm4, %v1320_v17  ;;  %v1323_v21 = vadd.f32 %v1957_v20, %v2534_v58  ;;  %v1314_v22 = vpop.f32.mrb[43].mxu0 }
 0x2ad   :  { %1543 = vst.msk [vmem:[%s2863_s7 + $0x40] sm:$0xff] %vm1534_vm4, %v1312_v19  ;;  %v1315_v23 = vadd.f32 %v2534_v58, %v1314_v22 }
 0x2ae   :  { %1546 = vst.msk [vmem:[%s2863_s7 + $0x58] sm:$0xff] %vm1534_vm4, %v1323_v21 }
 0x2af   :  { %1544 = vst.msk [vmem:[%s2863_s7 + $0x48] sm:$0xff] %vm1534_vm4, %v1315_v23 }
 0x2b1   :  { %v1960_v24 = vpop.f32.mrb[44].mxu0 }
 0x2b2   :  { %v1336_v25 = vadd.f32 %v1960_v24, %v2534_v58  ;;  %v1327_v26 = vpop.f32.mrb[45].mxu0 }
 0x2b3   :  { %v1328_v27 = vadd.f32 %v2534_v58, %v1327_v26  ;;  %v1961_v13 = vpop.f32.mrb[46].mxu0 }
 0x2b4   :  { %1549 = vst.msk [vmem:[%s2863_s7 + $0x70] sm:$0xff] %vm1534_vm4, %v1336_v25  ;;  %v1339_v15 = vadd.f32 %v1961_v13, %v2534_v58  ;;  %v1330_v42 = vpop.f32.mrb[47].mxu0 }
 0x2b5   :  { %1547 = vst.msk [vmem:[%s2863_s7 + $0x60] sm:$0xff] %vm1534_vm4, %v1328_v27  ;;  %v1331_v44 = vadd.f32 %v2534_v58, %v1330_v42 }
 0x2b6   :  { %1550 = vst.msk [vmem:[%s2863_s7 + $0x78] sm:$0xff] %vm1534_vm4, %v1339_v15 }
 0x2b7   :  { %1548 = vst.msk [vmem:[%s2863_s7 + $0x68] sm:$0xff] %vm1534_vm4, %v1331_v44 }
 0x2b9   :  { %v1964_v6 = vpop.f32.mrb[48].mxu0 }
 0x2ba   :  { %v1352_v8 = vadd.f32 %v1964_v6, %v2534_v58  ;;  %v1343_v36 = vpop.f32.mrb[49].mxu0 }
 0x2bb   :  { %v1344_v39 = vadd.f32 %v2534_v58, %v1343_v36  ;;  %v1965_v3 = vpop.f32.mrb[50].mxu0 }
 0x2bc   :  { %1553 = vst.msk [vmem:[%s2863_s7 + $0x90] sm:$0xff] %vm1534_vm4, %v1352_v8  ;;  %v1355_v5 = vadd.f32 %v1965_v3, %v2534_v58  ;;  %v1346_v28 = vpop.f32.mrb[51].mxu0 }
 0x2bd   :  { %1551 = vst.msk [vmem:[%s2863_s7 + $0x80] sm:$0xff] %vm1534_vm4, %v1344_v39  ;;  %v1347_v29 = vadd.f32 %v2534_v58, %v1346_v28 }
 0x2be   :  { %1554 = vst.msk [vmem:[%s2863_s7 + $0x98] sm:$0xff] %vm1534_vm4, %v1355_v5 }
 0x2bf   :  { %1552 = vst.msk [vmem:[%s2863_s7 + $0x88] sm:$0xff] %vm1534_vm4, %v1347_v29 }
 0x2c1   :  { %v1968_v30 = vpop.f32.mrb[52].mxu0 }
 0x2c2   :  { %v1368_v31 = vadd.f32 %v1968_v30, %v2534_v58  ;;  %v1359_v32 = vpop.f32.mrb[53].mxu0 }
 0x2c3   :  { %v1360_v33 = vadd.f32 %v2534_v58, %v1359_v32  ;;  %v1969_v34 = vpop.f32.mrb[54].mxu0 }
 0x2c4   :  { %1557 = vst.msk [vmem:[%s2863_s7 + $0xb0] sm:$0xff] %vm1534_vm4, %v1368_v31  ;;  %v1371_v35 = vadd.f32 %v1969_v34, %v2534_v58  ;;  %v1362_v38 = vpop.f32.mrb[55].mxu0 }
 0x2c5   :  { %1555 = vst.msk [vmem:[%s2863_s7 + $0xa0] sm:$0xff] %vm1534_vm4, %v1360_v33  ;;  %v1363_v40 = vadd.f32 %v2534_v58, %v1362_v38 }
 0x2c6   :  { %1558 = vst.msk [vmem:[%s2863_s7 + $0xb8] sm:$0xff] %vm1534_vm4, %v1371_v35 }
 0x2c7   :  { %1556 = vst.msk [vmem:[%s2863_s7 + $0xa8] sm:$0xff] %vm1534_vm4, %v1363_v40 }
 0x2c9   :  { %v1972_v41 = vpop.f32.mrb[56].mxu0 }
 0x2ca   :  { %v1384_v43 = vadd.f32 %v1972_v41, %v2534_v58  ;;  %v1375_v45 = vpop.f32.mrb[57].mxu0 }
 0x2cb   :  { %v1376_v46 = vadd.f32 %v2534_v58, %v1375_v45  ;;  %v1973_v47 = vpop.f32.mrb[58].mxu0 }
 0x2cc   :  { %1561 = vst.msk [vmem:[%s2863_s7 + $0xd0] sm:$0xff] %vm1534_vm4, %v1384_v43  ;;  %v1387_v48 = vadd.f32 %v1973_v47, %v2534_v58  ;;  %v1378_v49 = vpop.f32.mrb[59].mxu0 }
 0x2cd   :  { %1559 = vst.msk [vmem:[%s2863_s7 + $0xc0] sm:$0xff] %vm1534_vm4, %v1376_v46  ;;  %v1379_v50 = vadd.f32 %v2534_v58, %v1378_v49 }
 0x2ce   :  { %1562 = vst.msk [vmem:[%s2863_s7 + $0xd8] sm:$0xff] %vm1534_vm4, %v1387_v48 }
 0x2cf   :  { %1560 = vst.msk [vmem:[%s2863_s7 + $0xc8] sm:$0xff] %vm1534_vm4, %v1379_v50 }
 0x2d1   :  { %v1976_v51 = vpop.f32.mrb[60].mxu0 }
 0x2d2   :  { %v1400_v52 = vadd.f32 %v1976_v51, %v2534_v58  ;;  %v1391_v53 = vpop.f32.mrb[61].mxu0 }
 0x2d3   :  { %v1392_v54 = vadd.f32 %v2534_v58, %v1391_v53  ;;  %v1977_v55 = vpop.f32.mrb[62].mxu0 }
 0x2d4   :  { %1565 = vst.msk [vmem:[%s2863_s7 + $0xf0] sm:$0xff] %vm1534_vm4, %v1400_v52  ;;  %v1403_v56 = vadd.f32 %v1977_v55, %v2534_v58  ;;  %v1394_v57 = vpop.f32.mrb[63].mxu0 }
 0x2d5   :  { %1563 = vst.msk [vmem:[%s2863_s7 + $0xe0] sm:$0xff] %vm1534_vm4, %v1392_v54  ;;  %v1395_v59 = vadd.f32 %v2534_v58, %v1394_v57 }
 0x2d6   :  { %1566 = vst.msk [vmem:[%s2863_s7 + $0xf8] sm:$0xff] %vm1534_vm4, %v1403_v56 }
 0x2d7   :  { %1564 = vst.msk [vmem:[%s2863_s7 + $0xe8] sm:$0xff] %vm1534_vm4, %v1395_v59 }
 0x2d9   :  { %v1980_v60 = vpop.f32.mrb[64].mxu0 }
 0x2da   :  { %v1416_v37 = vadd.f32 %v1980_v60, %v2534_v58  ;;  %v1407_v61 = vpop.f32.mrb[65].mxu0 }
 0x2db   :  { %v1408_v62 = vadd.f32 %v2534_v58, %v1407_v61  ;;  %v1981_v63 = vpop.f32.mrb[66].mxu0 }
 0x2dc   :  { %1569 = vst.msk [vmem:[%s2863_s7 + $0x110] sm:$0xff] %vm1534_vm4, %v1416_v37  ;;  %v1419_v0 = vadd.f32 %v1981_v63, %v2534_v58  ;;  %v1410_v1 = vpop.f32.mrb[67].mxu0 }
 0x2dd   :  { %1567 = vst.msk [vmem:[%s2863_s7 + $0x100] sm:$0xff] %vm1534_vm4, %v1408_v62  ;;  %v1411_v2 = vadd.f32 %v2534_v58, %v1410_v1 }
 0x2de   :  { %1570 = vst.msk [vmem:[%s2863_s7 + $0x118] sm:$0xff] %vm1534_vm4, %v1419_v0 }
 0x2df   :  { %1568 = vst.msk [vmem:[%s2863_s7 + $0x108] sm:$0xff] %vm1534_vm4, %v1411_v2 }
 0x2e1   :  { %v1984_v4 = vpop.f32.mrb[68].mxu0 }
 0x2e2   :  { %v1432_v7 = vadd.f32 %v1984_v4, %v2534_v58  ;;  %v1423_v9 = vpop.f32.mrb[69].mxu0 }
 0x2e3   :  { %v1424_v10 = vadd.f32 %v2534_v58, %v1423_v9  ;;  %v1985_v11 = vpop.f32.mrb[70].mxu0 }
 0x2e4   :  { %1573 = vst.msk [vmem:[%s2863_s7 + $0x130] sm:$0xff] %vm1534_vm4, %v1432_v7  ;;  %v1435_v12 = vadd.f32 %v1985_v11, %v2534_v58  ;;  %v1426_v14 = vpop.f32.mrb[71].mxu0 }
 0x2e5   :  { %1571 = vst.msk [vmem:[%s2863_s7 + $0x120] sm:$0xff] %vm1534_vm4, %v1424_v10  ;;  %v1427_v16 = vadd.f32 %v2534_v58, %v1426_v14 }
 0x2e6   :  { %1574 = vst.msk [vmem:[%s2863_s7 + $0x138] sm:$0xff] %vm1534_vm4, %v1435_v12 }
 0x2e7   :  { %1572 = vst.msk [vmem:[%s2863_s7 + $0x128] sm:$0xff] %vm1534_vm4, %v1427_v16 }
 0x2e9   :  { %v1988_v17 = vpop.f32.mrb[72].mxu0 }
 0x2ea   :  { %v1448_v18 = vadd.f32 %v1988_v17, %v2534_v58  ;;  %v1439_v19 = vpop.f32.mrb[73].mxu0 }
 0x2eb   :  { %v1440_v20 = vadd.f32 %v2534_v58, %v1439_v19  ;;  %v1989_v21 = vpop.f32.mrb[74].mxu0 }
 0x2ec   :  { %1577 = vst.msk [vmem:[%s2863_s7 + $0x150] sm:$0xff] %vm1534_vm4, %v1448_v18  ;;  %v1451_v22 = vadd.f32 %v1989_v21, %v2534_v58  ;;  %v1442_v23 = vpop.f32.mrb[75].mxu0 }
 0x2ed   :  { %1575 = vst.msk [vmem:[%s2863_s7 + $0x140] sm:$0xff] %vm1534_vm4, %v1440_v20  ;;  %v1443_v24 = vadd.f32 %v2534_v58, %v1442_v23 }
 0x2ee   :  { %1578 = vst.msk [vmem:[%s2863_s7 + $0x158] sm:$0xff] %vm1534_vm4, %v1451_v22 }
 0x2ef   :  { %1576 = vst.msk [vmem:[%s2863_s7 + $0x148] sm:$0xff] %vm1534_vm4, %v1443_v24 }
 0x2f1   :  { %v1992_v25 = vpop.f32.mrb[76].mxu0 }
 0x2f2   :  { %v1464_v26 = vadd.f32 %v1992_v25, %v2534_v58  ;;  %v1455_v27 = vpop.f32.mrb[77].mxu0 }
 0x2f3   :  { %v1456_v13 = vadd.f32 %v2534_v58, %v1455_v27  ;;  %v1993_v15 = vpop.f32.mrb[78].mxu0 }
 0x2f4   :  { %1581 = vst.msk [vmem:[%s2863_s7 + $0x170] sm:$0xff] %vm1534_vm4, %v1464_v26  ;;  %v1467_v42 = vadd.f32 %v1993_v15, %v2534_v58  ;;  %v1458_v44 = vpop.f32.mrb[79].mxu0 }
 0x2f5   :  { %1579 = vst.msk [vmem:[%s2863_s7 + $0x160] sm:$0xff] %vm1534_vm4, %v1456_v13  ;;  %v1459_v6 = vadd.f32 %v2534_v58, %v1458_v44 }
 0x2f6   :  { %1582 = vst.msk [vmem:[%s2863_s7 + $0x178] sm:$0xff] %vm1534_vm4, %v1467_v42 }
 0x2f7   :  { %1580 = vst.msk [vmem:[%s2863_s7 + $0x168] sm:$0xff] %vm1534_vm4, %v1459_v6 }
 0x2f9   :  { %v1996_v8 = vpop.f32.mrb[80].mxu0 }
 0x2fa   :  { %v1480_v36 = vadd.f32 %v1996_v8, %v2534_v58  ;;  %v1471_v39 = vpop.f32.mrb[81].mxu0 }
 0x2fb   :  { %v1472_v3 = vadd.f32 %v2534_v58, %v1471_v39  ;;  %v1997_v5 = vpop.f32.mrb[82].mxu0 }
 0x2fc   :  { %1585 = vst.msk [vmem:[%s2863_s7 + $0x190] sm:$0xff] %vm1534_vm4, %v1480_v36  ;;  %v1483_v28 = vadd.f32 %v1997_v5, %v2534_v58  ;;  %v1474_v29 = vpop.f32.mrb[83].mxu0 }
 0x2fd   :  { %1583 = vst.msk [vmem:[%s2863_s7 + $0x180] sm:$0xff] %vm1534_vm4, %v1472_v3  ;;  %v1475_v30 = vadd.f32 %v2534_v58, %v1474_v29 }
 0x2fe   :  { %1586 = vst.msk [vmem:[%s2863_s7 + $0x198] sm:$0xff] %vm1534_vm4, %v1483_v28 }
 0x2ff   :  { %1584 = vst.msk [vmem:[%s2863_s7 + $0x188] sm:$0xff] %vm1534_vm4, %v1475_v30 }
 0x301   :  { %v2000_v31 = vpop.f32.mrb[84].mxu0 }
 0x302   :  { %v1496_v32 = vadd.f32 %v2000_v31, %v2534_v58  ;;  %v1487_v33 = vpop.f32.mrb[85].mxu0 }
 0x303   :  { %v1488_v34 = vadd.f32 %v2534_v58, %v1487_v33  ;;  %v2001_v35 = vpop.f32.mrb[86].mxu0 }
 0x304   :  { %1589 = vst.msk [vmem:[%s2863_s7 + $0x1b0] sm:$0xff] %vm1534_vm4, %v1496_v32  ;;  %v1499_v38 = vadd.f32 %v2001_v35, %v2534_v58  ;;  %v1490_v40 = vpop.f32.mrb[87].mxu0 }
 0x305   :  { %1587 = vst.msk [vmem:[%s2863_s7 + $0x1a0] sm:$0xff] %vm1534_vm4, %v1488_v34  ;;  %v1491_v41 = vadd.f32 %v2534_v58, %v1490_v40 }
 0x306   :  { %1590 = vst.msk [vmem:[%s2863_s7 + $0x1b8] sm:$0xff] %vm1534_vm4, %v1499_v38 }
 0x307   :  { %1588 = vst.msk [vmem:[%s2863_s7 + $0x1a8] sm:$0xff] %vm1534_vm4, %v1491_v41 }
 0x309   :  { %v2004_v43 = vpop.f32.mrb[88].mxu0 }
 0x30a   :  { %v1512_v45 = vadd.f32 %v2004_v43, %v2534_v58  ;;  %v1503_v46 = vpop.f32.mrb[89].mxu0 }
 0x30b   :  { %v1504_v47 = vadd.f32 %v2534_v58, %v1503_v46  ;;  %v2005_v48 = vpop.f32.mrb[90].mxu0 }
 0x30c   :  { %1593 = vst.msk [vmem:[%s2863_s7 + $0x1d0] sm:$0xff] %vm1534_vm4, %v1512_v45  ;;  %v1515_v49 = vadd.f32 %v2005_v48, %v2534_v58  ;;  %v1506_v50 = vpop.f32.mrb[91].mxu0 }
 0x30d   :  { %1591 = vst.msk [vmem:[%s2863_s7 + $0x1c0] sm:$0xff] %vm1534_vm4, %v1504_v47  ;;  %v1507_v51 = vadd.f32 %v2534_v58, %v1506_v50 }
 0x30e   :  { %1594 = vst.msk [vmem:[%s2863_s7 + $0x1d8] sm:$0xff] %vm1534_vm4, %v1515_v49 }
 0x30f   :  { %1592 = vst.msk [vmem:[%s2863_s7 + $0x1c8] sm:$0xff] %vm1534_vm4, %v1507_v51 }
 0x311   :  { %v2008_v52 = vpop.f32.mrb[92].mxu0 }
 0x312   :  { %v1528_v53 = vadd.f32 %v2008_v52, %v2534_v58  ;;  %v1519_v54 = vpop.f32.mrb[93].mxu0 }
 0x313   :  { %v1520_v55 = vadd.f32 %v2534_v58, %v1519_v54  ;;  %v2009_v56 = vpop.f32.mrb[94].mxu0 }
 0x314   :  { %1597 = vst.msk [vmem:[%s2863_s7 + $0x1f0] sm:$0xff] %vm1534_vm4, %v1528_v53  ;;  %v1531_v57 = vadd.f32 %v2009_v56, %v2534_v58  ;;  %v1522_v59 = vpop.f32.mrb[95].mxu0 }
 0x315   :  { %1595 = vst.msk [vmem:[%s2863_s7 + $0x1e0] sm:$0xff] %vm1534_vm4, %v1520_v55  ;;  %v1523_v60 = vadd.f32 %v2534_v58, %v1522_v59 }
 0x316   :  { %1598 = vst.msk [vmem:[%s2863_s7 + $0x1f8] sm:$0xff] %vm1534_vm4, %v1531_v57 }
 0x317   :  { %1596 = vst.msk [vmem:[%s2863_s7 + $0x1e8] sm:$0xff] %vm1534_vm4, %v1523_v60 }

</bundles_post_ra>
